<compile_context>
chip_gen: v6e
topology: v6e:2x2x1
jax: 0.10.0
libtpu: 0.0.40
codegen_flags: <defaults>
</compile_context>

<pallas_src>
import functools

import jax
import jax.numpy as jnp
from jax.experimental import pallas as pl
from jax.experimental.pallas import tpu as pltpu

LN_EPS = 1e-5          # torch.nn.LayerNorm default
H1, H2 = 400, 300      # true hidden widths (as in the torch module)
H1P, H2P = 512, 384    # lane-aligned (multiple-of-128) padded widths
QOUT = 128             # lane-dense output slab width; column 0 is the Q value


def _round_up(x, m):
    return (x + m - 1) // m * m


def _layernorm_masked(x, gamma, beta, true_n):
    """LayerNorm over the first `true_n` features of a zero-padded tensor.

    Padded lanes of `x` are exactly zero, so sums over the padded width equal
    sums over the real lanes; divide by the true count.  One-pass stats
    (var = E[x^2] - mu^2, clamped at 0).  gamma/beta are zero in padded
    lanes, so padded outputs remain exactly zero.
    """
    inv_n = 1.0 / float(true_n)
    s = jnp.sum(x, axis=-1, keepdims=True)
    ss = jnp.sum(x * x, axis=-1, keepdims=True)
    mu = s * inv_n
    var = jnp.maximum(ss * inv_n - mu * mu, 0.0)
    return (x - mu) * jax.lax.rsqrt(var + LN_EPS) * gamma + beta


def critic_kernel(
    x_ref,                               # (tm, num_obs + num_act) f32
    wsa_ref, bsa_ref,                    # fused block-diag first layer
    g1_ref, be1_ref,
    w2_ref, b2_ref, g2_ref, be2_ref,
    w4_ref, b4_ref,
    out_ref,                             # (tm, QOUT) f32; col 0 = Q value
    *, h1_true, h2_true,
):
    # bf16 operands into the MXU, f32 accumulation; elementwise math in f32.
    x = x_ref[...].astype(jnp.bfloat16)

    # fused (state @ W1 | action @ Wa): one MXU call, K = num_obs + num_act.
    y = jnp.dot(x, wsa_ref[...], preferred_element_type=jnp.float32) + bsa_ref[...]
    h1_pre = y[:, :H1P]                  # 512 lanes -> tile-aligned slice
    av = y[:, H1P:]                      # 384 lanes -> tile-aligned slice

    # LayerNorm -> relu
    h1 = jnp.maximum(
        _layernorm_masked(h1_pre, g1_ref[...], be1_ref[...], h1_true), 0.0)

    # l2 -> LayerNorm
    h2 = jnp.dot(h1.astype(jnp.bfloat16), w2_ref[...],
                 preferred_element_type=jnp.float32) + b2_ref[...]
    h2 = _layernorm_masked(h2, g2_ref[...], be2_ref[...], h2_true)

    # relu(add) -> l4 on the MXU (w4 padded to (H2P, QOUT), real col 0 only).
    sa = jnp.maximum(h2 + av, 0.0)
    q = jnp.dot(sa.astype(jnp.bfloat16), w4_ref[...],
                preferred_element_type=jnp.float32) + b4_ref[...]
    out_ref[...] = q.astype(out_ref.dtype)


def _pick_batch_tile(b8):
    """Large tiles amortize per-grid-step overhead; >=2 tiles once the batch
    is big enough so dual-TC chips (v7x) get work on the parallel axis; cap at
    1024 rows so f32 intermediates stay at a few MB (v7x-safe VMEM)."""
    if b8 <= 256:
        return b8
    return min(1024, _round_up((b8 + 1) // 2, 8))


def critic_forward(state, action, packed):
    """state: (B, num_obs) f32, action: (B, num_actions) f32 -> (B, 1) f32."""
    B, num_obs = state.shape
    num_act = action.shape[1]
    k_in = num_obs + num_act

    b8 = _round_up(B, 8)
    tm = _pick_batch_tile(b8)
    bp = _round_up(B, tm)

    # fuse inputs into one lane-contiguous slab: [state | action]
    x = jnp.concatenate(
        [jnp.pad(state, ((0, bp - B), (0, 0))),
         jnp.pad(action, ((0, bp - B), (0, 0)))], axis=1)

    weights = (
        packed["wsa"], packed["bsa"],
        packed["g1"], packed["be1"],
        packed["w2"], packed["b2"], packed["g2"], packed["be2"],
        packed["w4"], packed["b4"],
    )

    def make_specs(single_buffer_weights):
        if single_buffer_weights:
            def resident(a):
                # constant block index -> VMEM-resident; single-buffered.
                return pl.BlockSpec(a.shape, lambda i: (0, 0),
                                    pipeline_mode=pl.Buffered(1))
        else:
            def resident(a):
                return pl.BlockSpec(a.shape, lambda i: (0, 0))
        in_specs = ([pl.BlockSpec((tm, k_in), lambda i: (i, 0))]
                    + [resident(w) for w in weights])
        out_spec = pl.BlockSpec((tm, QOUT), lambda i: (i, 0))
        return in_specs, out_spec

    flops = 2 * bp * (k_in * (H1P + H2P) + H1P * H2P + H2P * QOUT)
    bytes_accessed = (
        int(x.size) * 4
        + sum(int(w.size) * w.dtype.itemsize for w in weights)
        + bp * QOUT * 4)
    cost = pl.CostEstimate(flops=flops, transcendentals=2 * bp,
                           bytes_accessed=bytes_accessed)

    def build(single_buffer_weights):
        in_specs, out_spec = make_specs(single_buffer_weights)
        return pl.pallas_call(
            functools.partial(critic_kernel, h1_true=H1, h2_true=H2),
            out_shape=jax.ShapeDtypeStruct((bp, QOUT), jnp.float32),
            grid=(bp // tm,),
            in_specs=in_specs,
            out_specs=out_spec,
            compiler_params=pltpu.CompilerParams(
                dimension_semantics=("parallel",),   # shard tiles over TCs (v7x)
                vmem_limit_bytes=32 * 1024 * 1024,
            ),
            cost_estimate=cost,
        )

    try:
        out = build(True)(x, *weights)
    except Exception:
        # pipeline_mode=Buffered(1) not accepted on this jax -> default buffering
        out = build(False)(x, *weights)

    return out[:B, :1]


def init_params(key, num_obs, num_actions):
    """Deterministic init mirroring CriticNetwork.initialize_weights().

    Weights stored pre-transposed as (in_features, out_features), true widths.
    """
    k = jax.random.split(key, 8)

    def unif(k_, shape, bound):
        return jax.random.uniform(k_, shape, jnp.float32, -bound, bound)

    b1 = 1.0 / jnp.sqrt(float(H1))
    b2 = 1.0 / jnp.sqrt(float(H2))
    ba = 1.0 / jnp.sqrt(float(H2))   # action_layer out_features == 300
    b4 = 0.003

    return {
        "w1": unif(k[0], (num_obs, H1), b1), "b1": unif(k[1], (1, H1), b1),
        "g1": jnp.ones((1, H1), jnp.float32), "be1": jnp.zeros((1, H1), jnp.float32),
        "w2": unif(k[2], (H1, H2), b2), "b2": unif(k[3], (1, H2), b2),
        "g2": jnp.ones((1, H2), jnp.float32), "be2": jnp.zeros((1, H2), jnp.float32),
        "wa": unif(k[4], (num_actions, H2), ba), "ba": unif(k[5], (1, H2), ba),
        "w4": unif(k[6], (H2, 1), b4), "b4": unif(k[7], (1, 1), b4),
    }


def pack_params(p, num_obs, num_actions):
    """Zero-pad hidden dims to lane multiples, fuse (W1|Wa) block-diagonally,
    pad W4 to a lane-dense column block; matmul weights in bf16."""
    def pad_last(a, n):
        return jnp.pad(a, ((0, 0), (0, n - a.shape[-1])))

    # fused first-layer weight: [[W1, 0], [0, Wa]] -> (num_obs+num_act, H1P+H2P)
    wsa = jnp.zeros((num_obs + num_actions, H1P + H2P), jnp.float32)
    wsa = wsa.at[:num_obs, :H1P].set(pad_last(p["w1"], H1P))
    wsa = wsa.at[num_obs:, H1P:].set(pad_last(p["wa"], H2P))
    bsa = jnp.concatenate([pad_last(p["b1"], H1P), pad_last(p["ba"], H2P)], axis=1)

    # final layer on MXU: (H2P, QOUT), real values only in column 0
    w4 = jnp.zeros((H2P, QOUT), jnp.float32).at[:H2, :1].set(p["w4"])
    b4 = jnp.zeros((1, QOUT), jnp.float32).at[:, :1].set(p["b4"])

    return {
        "wsa": wsa.astype(jnp.bfloat16),
        "bsa": bsa,
        "g1": pad_last(p["g1"], H1P), "be1": pad_last(p["be1"], H1P),
        "w2": jnp.pad(p["w2"], ((0, H1P - H1), (0, H2P - H2))).astype(jnp.bfloat16),
        "b2": pad_last(p["b2"], H2P),
        "g2": pad_last(p["g2"], H2P), "be2": pad_last(p["be2"], H2P),
        "w4": w4.astype(jnp.bfloat16),
        "b4": b4,
    }


# ---------------- pure-JAX references for correctness checks ----------------

def _layernorm_ref(x, gamma, beta):
    mu = jnp.mean(x, axis=-1, keepdims=True)
    var = jnp.mean((x - mu) ** 2, axis=-1, keepdims=True)
    return (x - mu) * jax.lax.rsqrt(var + LN_EPS) * gamma + beta


def critic_ref_f32(state, action, p):
    h1 = jnp.maximum(_layernorm_ref(state @ p["w1"] + p["b1"], p["g1"], p["be1"]), 0.0)
    h2 = _layernorm_ref(h1 @ p["w2"] + p["b2"], p["g2"], p["be2"])
    av = action @ p["wa"] + p["ba"]
    sa = jnp.maximum(h2 + av, 0.0)
    return sa @ p["w4"] + p["b4"]


def critic_ref_bf16(state, action, p):
    """Mirrors the kernel's bf16-matmul / f32-accumulate numerics."""
    def mm(x, w):
        return jnp.dot(x.astype(jnp.bfloat16), w.astype(jnp.bfloat16),
                       preferred_element_type=jnp.float32)
    h1 = jnp.maximum(_layernorm_ref(mm(state, p["w1"]) + p["b1"], p["g1"], p["be1"]), 0.0)
    h2 = _layernorm_ref(mm(h1, p["w2"]) + p["b2"], p["g2"], p["be2"])
    av = mm(action, p["wa"]) + p["ba"]
    sa = jnp.maximum(h2 + av, 0.0)
    return mm(sa, p["w4"]) + p["b4"]


if __name__ == "__main__":
    key = jax.random.PRNGKey(0)
    k_param, k_state, k_action = jax.random.split(key, 3)

    batch = 8
    num_obs = 32
    num_actions = 8

    params = init_params(k_param, num_obs, num_actions)
    packed = pack_params(params, num_obs, num_actions)

    state = jax.random.normal(k_state, (batch, num_obs), jnp.float32)
    action = jax.random.normal(k_action, (batch, num_actions), jnp.float32)

    out = jax.block_until_ready(critic_forward(state, action, packed))
    assert out.shape == (batch, 1), out.shape

    ref_exact = critic_ref_bf16(state, action, params)   # same numerics as kernel
    ref_f32 = critic_ref_f32(state, action, params)      # full-f32 torch semantics
    assert jnp.allclose(out, ref_exact, atol=2e-3, rtol=2e-3), (out, ref_exact)
    # tolerance vs. f32 reference relaxed deliberately for bf16 matmuls
    assert jnp.allclose(out, ref_f32, atol=2e-2, rtol=2e-2), (out, ref_f32)
    print("KERNEL_OK")
</pallas_src>

<mosaic_0001>
module attributes {stable_mosaic.version = 11 : i64} {
  func.func @critic_kernel(%arg0: i32, %arg1: memref<8x40xf32, #tpu.memory_space<vmem>>, %arg2: memref<40x896xbf16, #tpu.memory_space<vmem>>, %arg3: memref<1x896xf32, #tpu.memory_space<vmem>>, %arg4: memref<1x512xf32, #tpu.memory_space<vmem>>, %arg5: memref<1x512xf32, #tpu.memory_space<vmem>>, %arg6: memref<512x384xbf16, #tpu.memory_space<vmem>>, %arg7: memref<1x384xf32, #tpu.memory_space<vmem>>, %arg8: memref<1x384xf32, #tpu.memory_space<vmem>>, %arg9: memref<1x384xf32, #tpu.memory_space<vmem>>, %arg10: memref<384x128xbf16, #tpu.memory_space<vmem>>, %arg11: memref<1x128xf32, #tpu.memory_space<vmem>>, %arg12: memref<8x128xf32, #tpu.memory_space<vmem>>) attributes {dimension_semantics = [#tpu.dimension_semantics<parallel>], iteration_bounds = array<i64: 1>, scalar_prefetch = 0 : i64, scratch_operands = 0 : i64, tpu.core_type = #tpu.core_type<tc>, window_params = [{transform_indices = @transform_0, window_bounds = array<i64: 8, 40>}, {pipeline_mode = #tpu.pipeline_mode<synchronous>, transform_indices = @transform_1, window_bounds = array<i64: 40, 896>}, {pipeline_mode = #tpu.pipeline_mode<synchronous>, transform_indices = @transform_2, window_bounds = array<i64: 1, 896>}, {pipeline_mode = #tpu.pipeline_mode<synchronous>, transform_indices = @transform_3, window_bounds = array<i64: 1, 512>}, {pipeline_mode = #tpu.pipeline_mode<synchronous>, transform_indices = @transform_4, window_bounds = array<i64: 1, 512>}, {pipeline_mode = #tpu.pipeline_mode<synchronous>, transform_indices = @transform_5, window_bounds = array<i64: 512, 384>}, {pipeline_mode = #tpu.pipeline_mode<synchronous>, transform_indices = @transform_6, window_bounds = array<i64: 1, 384>}, {pipeline_mode = #tpu.pipeline_mode<synchronous>, transform_indices = @transform_7, window_bounds = array<i64: 1, 384>}, {pipeline_mode = #tpu.pipeline_mode<synchronous>, transform_indices = @transform_8, window_bounds = array<i64: 1, 384>}, {pipeline_mode = #tpu.pipeline_mode<synchronous>, transform_indices = @transform_9, window_bounds = array<i64: 384, 128>}, {pipeline_mode = #tpu.pipeline_mode<synchronous>, transform_indices = @transform_10, window_bounds = array<i64: 1, 128>}, {transform_indices = @transform_11, window_bounds = array<i64: 8, 128>}]} {
    %c0 = arith.constant 0 : index
    %c0_0 = arith.constant 0 : index
    %0 = vector.load %arg1[%c0, %c0_0] : memref<8x40xf32, #tpu.memory_space<vmem>>, vector<8x40xf32>
    %1 = arith.truncf %0 : vector<8x40xf32> to vector<8x40xbf16>
    %c0_1 = arith.constant 0 : index
    %c0_2 = arith.constant 0 : index
    %2 = vector.load %arg2[%c0_1, %c0_2] : memref<40x896xbf16, #tpu.memory_space<vmem>>, vector<40x896xbf16>
    %cst = arith.constant dense<0.000000e+00> : vector<8x896xf32>
    %3 = tpu.matmul %1, %2, %cst {dimension_numbers = #tpu.dot_dimension_numbers<[1], [0], [0], [1], [0, 0, 1, 1], [], []>} : vector<8x40xbf16>, vector<40x896xbf16>, vector<8x896xf32> -> vector<8x896xf32>
    %c0_3 = arith.constant 0 : index
    %c0_4 = arith.constant 0 : index
    %4 = vector.load %arg3[%c0_3, %c0_4] : memref<1x896xf32, #tpu.memory_space<vmem>>, vector<1x896xf32>
    %5 = vector.broadcast %4 : vector<1x896xf32> to vector<8x896xf32>
    %6 = arith.addf %3, %5 : vector<8x896xf32>
    %7 = vector.extract_strided_slice %6 {offsets = [0, 0], sizes = [8, 512], strides = [1, 1]} : vector<8x896xf32> to vector<8x512xf32>
    %8 = vector.extract_strided_slice %6 {offsets = [0, 512], sizes = [8, 384], strides = [1, 1]} : vector<8x896xf32> to vector<8x384xf32>
    %c0_5 = arith.constant 0 : index
    %c0_6 = arith.constant 0 : index
    %9 = vector.load %arg4[%c0_5, %c0_6] : memref<1x512xf32, #tpu.memory_space<vmem>>, vector<1x512xf32>
    %c0_7 = arith.constant 0 : index
    %c0_8 = arith.constant 0 : index
    %10 = vector.load %arg5[%c0_7, %c0_8] : memref<1x512xf32, #tpu.memory_space<vmem>>, vector<1x512xf32>
    %cst_9 = arith.constant dense<0.000000e+00> : vector<8xf32>
    %11 = vector.multi_reduction <add>, %7, %cst_9 [1] : vector<8x512xf32> to vector<8xf32>
    %12 = vector.shape_cast %11 : vector<8xf32> to vector<8x1xf32>
    %13 = arith.mulf %7, %7 : vector<8x512xf32>
    %cst_10 = arith.constant dense<0.000000e+00> : vector<8xf32>
    %14 = vector.multi_reduction <add>, %13, %cst_10 [1] : vector<8x512xf32> to vector<8xf32>
    %15 = vector.shape_cast %14 : vector<8xf32> to vector<8x1xf32>
    %cst_11 = arith.constant 2.500000e-03 : f32
    %16 = vector.broadcast %cst_11 : f32 to vector<8x1xf32>
    %17 = arith.mulf %12, %16 : vector<8x1xf32>
    %cst_12 = arith.constant 2.500000e-03 : f32
    %18 = vector.broadcast %cst_12 : f32 to vector<8x1xf32>
    %19 = arith.mulf %15, %18 : vector<8x1xf32>
    %20 = arith.mulf %17, %17 : vector<8x1xf32>
    %21 = arith.subf %19, %20 : vector<8x1xf32>
    %cst_13 = arith.constant 0.000000e+00 : f32
    %22 = vector.broadcast %cst_13 : f32 to vector<8x1xf32>
    %23 = arith.maximumf %21, %22 : vector<8x1xf32>
    %24 = vector.broadcast %17 : vector<8x1xf32> to vector<8x512xf32>
    %25 = arith.subf %7, %24 : vector<8x512xf32>
    %cst_14 = arith.constant 9.99999974E-6 : f32
    %26 = vector.broadcast %cst_14 : f32 to vector<8x1xf32>
    %27 = arith.addf %23, %26 : vector<8x1xf32>
    %28 = math.rsqrt %27 : vector<8x1xf32>
    %29 = vector.broadcast %28 : vector<8x1xf32> to vector<8x512xf32>
    %30 = arith.mulf %25, %29 : vector<8x512xf32>
    %31 = vector.broadcast %9 : vector<1x512xf32> to vector<8x512xf32>
    %32 = arith.mulf %30, %31 : vector<8x512xf32>
    %33 = vector.broadcast %10 : vector<1x512xf32> to vector<8x512xf32>
    %34 = arith.addf %32, %33 : vector<8x512xf32>
    %cst_15 = arith.constant 0.000000e+00 : f32
    %35 = vector.broadcast %cst_15 : f32 to vector<8x512xf32>
    %36 = arith.maximumf %34, %35 : vector<8x512xf32>
    %37 = arith.truncf %36 : vector<8x512xf32> to vector<8x512xbf16>
    %c0_16 = arith.constant 0 : index
    %c0_17 = arith.constant 0 : index
    %38 = vector.load %arg6[%c0_16, %c0_17] : memref<512x384xbf16, #tpu.memory_space<vmem>>, vector<512x384xbf16>
    %cst_18 = arith.constant dense<0.000000e+00> : vector<8x384xf32>
    %39 = tpu.matmul %37, %38, %cst_18 {dimension_numbers = #tpu.dot_dimension_numbers<[1], [0], [0], [1], [0, 0, 1, 1], [], []>} : vector<8x512xbf16>, vector<512x384xbf16>, vector<8x384xf32> -> vector<8x384xf32>
    %c0_19 = arith.constant 0 : index
    %c0_20 = arith.constant 0 : index
    %40 = vector.load %arg7[%c0_19, %c0_20] : memref<1x384xf32, #tpu.memory_space<vmem>>, vector<1x384xf32>
    %41 = vector.broadcast %40 : vector<1x384xf32> to vector<8x384xf32>
    %42 = arith.addf %39, %41 : vector<8x384xf32>
    %c0_21 = arith.constant 0 : index
    %c0_22 = arith.constant 0 : index
    %43 = vector.load %arg8[%c0_21, %c0_22] : memref<1x384xf32, #tpu.memory_space<vmem>>, vector<1x384xf32>
    %c0_23 = arith.constant 0 : index
    %c0_24 = arith.constant 0 : index
    %44 = vector.load %arg9[%c0_23, %c0_24] : memref<1x384xf32, #tpu.memory_space<vmem>>, vector<1x384xf32>
    %cst_25 = arith.constant dense<0.000000e+00> : vector<8xf32>
    %45 = vector.multi_reduction <add>, %42, %cst_25 [1] : vector<8x384xf32> to vector<8xf32>
    %46 = vector.shape_cast %45 : vector<8xf32> to vector<8x1xf32>
    %47 = arith.mulf %42, %42 : vector<8x384xf32>
    %cst_26 = arith.constant dense<0.000000e+00> : vector<8xf32>
    %48 = vector.multi_reduction <add>, %47, %cst_26 [1] : vector<8x384xf32> to vector<8xf32>
    %49 = vector.shape_cast %48 : vector<8xf32> to vector<8x1xf32>
    %cst_27 = arith.constant 0.00333333341 : f32
    %50 = vector.broadcast %cst_27 : f32 to vector<8x1xf32>
    %51 = arith.mulf %46, %50 : vector<8x1xf32>
    %cst_28 = arith.constant 0.00333333341 : f32
    %52 = vector.broadcast %cst_28 : f32 to vector<8x1xf32>
    %53 = arith.mulf %49, %52 : vector<8x1xf32>
    %54 = arith.mulf %51, %51 : vector<8x1xf32>
    %55 = arith.subf %53, %54 : vector<8x1xf32>
    %cst_29 = arith.constant 0.000000e+00 : f32
    %56 = vector.broadcast %cst_29 : f32 to vector<8x1xf32>
    %57 = arith.maximumf %55, %56 : vector<8x1xf32>
    %58 = vector.broadcast %51 : vector<8x1xf32> to vector<8x384xf32>
    %59 = arith.subf %42, %58 : vector<8x384xf32>
    %cst_30 = arith.constant 9.99999974E-6 : f32
    %60 = vector.broadcast %cst_30 : f32 to vector<8x1xf32>
    %61 = arith.addf %57, %60 : vector<8x1xf32>
    %62 = math.rsqrt %61 : vector<8x1xf32>
    %63 = vector.broadcast %62 : vector<8x1xf32> to vector<8x384xf32>
    %64 = arith.mulf %59, %63 : vector<8x384xf32>
    %65 = vector.broadcast %43 : vector<1x384xf32> to vector<8x384xf32>
    %66 = arith.mulf %64, %65 : vector<8x384xf32>
    %67 = vector.broadcast %44 : vector<1x384xf32> to vector<8x384xf32>
    %68 = arith.addf %66, %67 : vector<8x384xf32>
    %69 = arith.addf %68, %8 : vector<8x384xf32>
    %cst_31 = arith.constant 0.000000e+00 : f32
    %70 = vector.broadcast %cst_31 : f32 to vector<8x384xf32>
    %71 = arith.maximumf %69, %70 : vector<8x384xf32>
    %72 = arith.truncf %71 : vector<8x384xf32> to vector<8x384xbf16>
    %c0_32 = arith.constant 0 : index
    %c0_33 = arith.constant 0 : index
    %73 = vector.load %arg10[%c0_32, %c0_33] : memref<384x128xbf16, #tpu.memory_space<vmem>>, vector<384x128xbf16>
    %cst_34 = arith.constant dense<0.000000e+00> : vector<8x128xf32>
    %74 = tpu.matmul %72, %73, %cst_34 {dimension_numbers = #tpu.dot_dimension_numbers<[1], [0], [0], [1], [0, 0, 1, 1], [], []>} : vector<8x384xbf16>, vector<384x128xbf16>, vector<8x128xf32> -> vector<8x128xf32>
    %c0_35 = arith.constant 0 : index
    %c0_36 = arith.constant 0 : index
    %75 = vector.load %arg11[%c0_35, %c0_36] : memref<1x128xf32, #tpu.memory_space<vmem>>, vector<1x128xf32>
    %76 = vector.broadcast %75 : vector<1x128xf32> to vector<8x128xf32>
    %77 = arith.addf %74, %76 : vector<8x128xf32>
    %c0_37 = arith.constant 0 : index
    %c0_38 = arith.constant 0 : index
    %78 = vector.load %arg12[%c0_37, %c0_38] : memref<8x128xf32, #tpu.memory_space<vmem>>, vector<8x128xf32>
    tpu.vector_store %arg12[%c0_37, %c0_38], %77 {strides = array<i32>} : memref<8x128xf32, #tpu.memory_space<vmem>>, vector<8x128xf32>,
    return
  }
  func.func @transform_0(%arg0: i32) -> (i32, i32) {
    %c0_i32 = arith.constant 0 : i32
    %c0_i32_0 = arith.constant 0 : i32
    return %arg0, %c0_i32 : i32, i32
  }
  func.func @transform_1(%arg0: i32) -> (i32, i32) {
    %c0_i32 = arith.constant 0 : i32
    %c0_i32_0 = arith.constant 0 : i32
    %c0_i32_1 = arith.constant 0 : i32
    return %c0_i32, %c0_i32_0 : i32, i32
  }
  func.func @transform_2(%arg0: i32) -> (i32, i32) {
    %c0_i32 = arith.constant 0 : i32
    %c0_i32_0 = arith.constant 0 : i32
    %c0_i32_1 = arith.constant 0 : i32
    return %c0_i32, %c0_i32_0 : i32, i32
  }
  func.func @transform_3(%arg0: i32) -> (i32, i32) {
    %c0_i32 = arith.constant 0 : i32
    %c0_i32_0 = arith.constant 0 : i32
    %c0_i32_1 = arith.constant 0 : i32
    return %c0_i32, %c0_i32_0 : i32, i32
  }
  func.func @transform_4(%arg0: i32) -> (i32, i32) {
    %c0_i32 = arith.constant 0 : i32
    %c0_i32_0 = arith.constant 0 : i32
    %c0_i32_1 = arith.constant 0 : i32
    return %c0_i32, %c0_i32_0 : i32, i32
  }
  func.func @transform_5(%arg0: i32) -> (i32, i32) {
    %c0_i32 = arith.constant 0 : i32
    %c0_i32_0 = arith.constant 0 : i32
    %c0_i32_1 = arith.constant 0 : i32
    return %c0_i32, %c0_i32_0 : i32, i32
  }
  func.func @transform_6(%arg0: i32) -> (i32, i32) {
    %c0_i32 = arith.constant 0 : i32
    %c0_i32_0 = arith.constant 0 : i32
    %c0_i32_1 = arith.constant 0 : i32
    return %c0_i32, %c0_i32_0 : i32, i32
  }
  func.func @transform_7(%arg0: i32) -> (i32, i32) {
    %c0_i32 = arith.constant 0 : i32
    %c0_i32_0 = arith.constant 0 : i32
    %c0_i32_1 = arith.constant 0 : i32
    return %c0_i32, %c0_i32_0 : i32, i32
  }
  func.func @transform_8(%arg0: i32) -> (i32, i32) {
    %c0_i32 = arith.constant 0 : i32
    %c0_i32_0 = arith.constant 0 : i32
    %c0_i32_1 = arith.constant 0 : i32
    return %c0_i32, %c0_i32_0 : i32, i32
  }
  func.func @transform_9(%arg0: i32) -> (i32, i32) {
    %c0_i32 = arith.constant 0 : i32
    %c0_i32_0 = arith.constant 0 : i32
    %c0_i32_1 = arith.constant 0 : i32
    return %c0_i32, %c0_i32_0 : i32, i32
  }
  func.func @transform_10(%arg0: i32) -> (i32, i32) {
    %c0_i32 = arith.constant 0 : i32
    %c0_i32_0 = arith.constant 0 : i32
    %c0_i32_1 = arith.constant 0 : i32
    return %c0_i32, %c0_i32_0 : i32, i32
  }
  func.func @transform_11(%arg0: i32) -> (i32, i32) {
    %c0_i32 = arith.constant 0 : i32
    %c0_i32_0 = arith.constant 0 : i32
    return %arg0, %c0_i32 : i32, i32
  }
}

module attributes {stable_mosaic.version = 11 : i64} {
  func.func @critic_kernel(%arg0: i32, %arg1: memref<8x40xf32, #tpu.memory_space<vmem>>, %arg2: memref<40x896xbf16, #tpu.memory_space<vmem>>, %arg3: memref<1x896xf32, #tpu.memory_space<vmem>>, %arg4: memref<1x512xf32, #tpu.memory_space<vmem>>, %arg5: memref<1x512xf32, #tpu.memory_space<vmem>>, %arg6: memref<512x384xbf16, #tpu.memory_space<vmem>>, %arg7: memref<1x384xf32, #tpu.memory_space<vmem>>, %arg8: memref<1x384xf32, #tpu.memory_space<vmem>>, %arg9: memref<1x384xf32, #tpu.memory_space<vmem>>, %arg10: memref<384x128xbf16, #tpu.memory_space<vmem>>, %arg11: memref<1x128xf32, #tpu.memory_space<vmem>>, %arg12: memref<8x128xf32, #tpu.memory_space<vmem>>) attributes {dimension_semantics = [#tpu.dimension_semantics<parallel>], iteration_bounds = array<i64: 1>, scalar_prefetch = 0 : i64, scratch_operands = 0 : i64, tpu.core_type = #tpu.core_type<tc>, window_params = [{transform_indices = @transform_0, window_bounds = array<i64: 8, 40>}, {pipeline_mode = #tpu.pipeline_mode<synchronous>, transform_indices = @transform_1, window_bounds = array<i64: 40, 896>}, {pipeline_mode = #tpu.pipeline_mode<synchronous>, transform_indices = @transform_2, window_bounds = array<i64: 1, 896>}, {pipeline_mode = #tpu.pipeline_mode<synchronous>, transform_indices = @transform_3, window_bounds = array<i64: 1, 512>}, {pipeline_mode = #tpu.pipeline_mode<synchronous>, transform_indices = @transform_4, window_bounds = array<i64: 1, 512>}, {pipeline_mode = #tpu.pipeline_mode<synchronous>, transform_indices = @transform_5, window_bounds = array<i64: 512, 384>}, {pipeline_mode = #tpu.pipeline_mode<synchronous>, transform_indices = @transform_6, window_bounds = array<i64: 1, 384>}, {pipeline_mode = #tpu.pipeline_mode<synchronous>, transform_indices = @transform_7, window_bounds = array<i64: 1, 384>}, {pipeline_mode = #tpu.pipeline_mode<synchronous>, transform_indices = @transform_8, window_bounds = array<i64: 1, 384>}, {pipeline_mode = #tpu.pipeline_mode<synchronous>, transform_indices = @transform_9, window_bounds = array<i64: 384, 128>}, {pipeline_mode = #tpu.pipeline_mode<synchronous>, transform_indices = @transform_10, window_bounds = array<i64: 1, 128>}, {transform_indices = @transform_11, window_bounds = array<i64: 8, 128>}]} {
    %c0 = arith.constant 0 : index
    %c0_0 = arith.constant 0 : index
    %0 = vector.load %arg1[%c0, %c0_0] : memref<8x40xf32, #tpu.memory_space<vmem>>, vector<8x40xf32>
    %1 = arith.truncf %0 : vector<8x40xf32> to vector<8x40xbf16>
    %c0_1 = arith.constant 0 : index
    %c0_2 = arith.constant 0 : index
    %2 = vector.load %arg2[%c0_1, %c0_2] : memref<40x896xbf16, #tpu.memory_space<vmem>>, vector<40x896xbf16>
    %cst = arith.constant dense<0.000000e+00> : vector<8x896xf32>
    %3 = tpu.matmul %1, %2, %cst {dimension_numbers = #tpu.dot_dimension_numbers<[1], [0], [0], [1], [0, 0, 1, 1], [], []>} : vector<8x40xbf16>, vector<40x896xbf16>, vector<8x896xf32> -> vector<8x896xf32>
    %c0_3 = arith.constant 0 : index
    %c0_4 = arith.constant 0 : index
    %4 = vector.load %arg3[%c0_3, %c0_4] : memref<1x896xf32, #tpu.memory_space<vmem>>, vector<1x896xf32>
    %5 = vector.broadcast %4 : vector<1x896xf32> to vector<8x896xf32>
    %6 = arith.addf %3, %5 : vector<8x896xf32>
    %7 = vector.extract_strided_slice %6 {offsets = [0, 0], sizes = [8, 512], strides = [1, 1]} : vector<8x896xf32> to vector<8x512xf32>
    %8 = vector.extract_strided_slice %6 {offsets = [0, 512], sizes = [8, 384], strides = [1, 1]} : vector<8x896xf32> to vector<8x384xf32>
    %c0_5 = arith.constant 0 : index
    %c0_6 = arith.constant 0 : index
    %9 = vector.load %arg4[%c0_5, %c0_6] : memref<1x512xf32, #tpu.memory_space<vmem>>, vector<1x512xf32>
    %c0_7 = arith.constant 0 : index
    %c0_8 = arith.constant 0 : index
    %10 = vector.load %arg5[%c0_7, %c0_8] : memref<1x512xf32, #tpu.memory_space<vmem>>, vector<1x512xf32>
    %cst_9 = arith.constant dense<0.000000e+00> : vector<8xf32>
    %11 = vector.multi_reduction <add>, %7, %cst_9 [1] : vector<8x512xf32> to vector<8xf32>
    %12 = vector.shape_cast %11 : vector<8xf32> to vector<8x1xf32>
    %13 = arith.mulf %7, %7 : vector<8x512xf32>
    %cst_10 = arith.constant dense<0.000000e+00> : vector<8xf32>
    %14 = vector.multi_reduction <add>, %13, %cst_10 [1] : vector<8x512xf32> to vector<8xf32>
    %15 = vector.shape_cast %14 : vector<8xf32> to vector<8x1xf32>
    %cst_11 = arith.constant 2.500000e-03 : f32
    %16 = vector.broadcast %cst_11 : f32 to vector<8x1xf32>
    %17 = arith.mulf %12, %16 : vector<8x1xf32>
    %cst_12 = arith.constant 2.500000e-03 : f32
    %18 = vector.broadcast %cst_12 : f32 to vector<8x1xf32>
    %19 = arith.mulf %15, %18 : vector<8x1xf32>
    %20 = arith.mulf %17, %17 : vector<8x1xf32>
    %21 = arith.subf %19, %20 : vector<8x1xf32>
    %cst_13 = arith.constant 0.000000e+00 : f32
    %22 = vector.broadcast %cst_13 : f32 to vector<8x1xf32>
    %23 = arith.maximumf %21, %22 : vector<8x1xf32>
    %24 = vector.broadcast %17 : vector<8x1xf32> to vector<8x512xf32>
    %25 = arith.subf %7, %24 : vector<8x512xf32>
    %cst_14 = arith.constant 9.99999974E-6 : f32
    %26 = vector.broadcast %cst_14 : f32 to vector<8x1xf32>
    %27 = arith.addf %23, %26 : vector<8x1xf32>
    %28 = math.rsqrt %27 : vector<8x1xf32>
    %29 = vector.broadcast %28 : vector<8x1xf32> to vector<8x512xf32>
    %30 = arith.mulf %25, %29 : vector<8x512xf32>
    %31 = vector.broadcast %9 : vector<1x512xf32> to vector<8x512xf32>
    %32 = arith.mulf %30, %31 : vector<8x512xf32>
    %33 = vector.broadcast %10 : vector<1x512xf32> to vector<8x512xf32>
    %34 = arith.addf %32, %33 : vector<8x512xf32>
    %cst_15 = arith.constant 0.000000e+00 : f32
    %35 = vector.broadcast %cst_15 : f32 to vector<8x512xf32>
    %36 = arith.maximumf %34, %35 : vector<8x512xf32>
    %37 = arith.truncf %36 : vector<8x512xf32> to vector<8x512xbf16>
    %c0_16 = arith.constant 0 : index
    %c0_17 = arith.constant 0 : index
    %38 = vector.load %arg6[%c0_16, %c0_17] : memref<512x384xbf16, #tpu.memory_space<vmem>>, vector<512x384xbf16>
    %cst_18 = arith.constant dense<0.000000e+00> : vector<8x384xf32>
    %39 = tpu.matmul %37, %38, %cst_18 {dimension_numbers = #tpu.dot_dimension_numbers<[1], [0], [0], [1], [0, 0, 1, 1], [], []>} : vector<8x512xbf16>, vector<512x384xbf16>, vector<8x384xf32> -> vector<8x384xf32>
    %c0_19 = arith.constant 0 : index
    %c0_20 = arith.constant 0 : index
    %40 = vector.load %arg7[%c0_19, %c0_20] : memref<1x384xf32, #tpu.memory_space<vmem>>, vector<1x384xf32>
    %41 = vector.broadcast %40 : vector<1x384xf32> to vector<8x384xf32>
    %42 = arith.addf %39, %41 : vector<8x384xf32>
    %c0_21 = arith.constant 0 : index
    %c0_22 = arith.constant 0 : index
    %43 = vector.load %arg8[%c0_21, %c0_22] : memref<1x384xf32, #tpu.memory_space<vmem>>, vector<1x384xf32>
    %c0_23 = arith.constant 0 : index
    %c0_24 = arith.constant 0 : index
    %44 = vector.load %arg9[%c0_23, %c0_24] : memref<1x384xf32, #tpu.memory_space<vmem>>, vector<1x384xf32>
    %cst_25 = arith.constant dense<0.000000e+00> : vector<8xf32>
    %45 = vector.multi_reduction <add>, %42, %cst_25 [1] : vector<8x384xf32> to vector<8xf32>
    %46 = vector.shape_cast %45 : vector<8xf32> to vector<8x1xf32>
    %47 = arith.mulf %42, %42 : vector<8x384xf32>
    %cst_26 = arith.constant dense<0.000000e+00> : vector<8xf32>
    %48 = vector.multi_reduction <add>, %47, %cst_26 [1] : vector<8x384xf32> to vector<8xf32>
    %49 = vector.shape_cast %48 : vector<8xf32> to vector<8x1xf32>
    %cst_27 = arith.constant 0.00333333341 : f32
    %50 = vector.broadcast %cst_27 : f32 to vector<8x1xf32>
    %51 = arith.mulf %46, %50 : vector<8x1xf32>
    %cst_28 = arith.constant 0.00333333341 : f32
    %52 = vector.broadcast %cst_28 : f32 to vector<8x1xf32>
    %53 = arith.mulf %49, %52 : vector<8x1xf32>
    %54 = arith.mulf %51, %51 : vector<8x1xf32>
    %55 = arith.subf %53, %54 : vector<8x1xf32>
    %cst_29 = arith.constant 0.000000e+00 : f32
    %56 = vector.broadcast %cst_29 : f32 to vector<8x1xf32>
    %57 = arith.maximumf %55, %56 : vector<8x1xf32>
    %58 = vector.broadcast %51 : vector<8x1xf32> to vector<8x384xf32>
    %59 = arith.subf %42, %58 : vector<8x384xf32>
    %cst_30 = arith.constant 9.99999974E-6 : f32
    %60 = vector.broadcast %cst_30 : f32 to vector<8x1xf32>
    %61 = arith.addf %57, %60 : vector<8x1xf32>
    %62 = math.rsqrt %61 : vector<8x1xf32>
    %63 = vector.broadcast %62 : vector<8x1xf32> to vector<8x384xf32>
    %64 = arith.mulf %59, %63 : vector<8x384xf32>
    %65 = vector.broadcast %43 : vector<1x384xf32> to vector<8x384xf32>
    %66 = arith.mulf %64, %65 : vector<8x384xf32>
    %67 = vector.broadcast %44 : vector<1x384xf32> to vector<8x384xf32>
    %68 = arith.addf %66, %67 : vector<8x384xf32>
    %69 = arith.addf %68, %8 : vector<8x384xf32>
    %cst_31 = arith.constant 0.000000e+00 : f32
    %70 = vector.broadcast %cst_31 : f32 to vector<8x384xf32>
    %71 = arith.maximumf %69, %70 : vector<8x384xf32>
    %72 = arith.truncf %71 : vector<8x384xf32> to vector<8x384xbf16>
    %c0_32 = arith.constant 0 : index
    %c0_33 = arith.constant 0 : index
    %73 = vector.load %arg10[%c0_32, %c0_33] : memref<384x128xbf16, #tpu.memory_space<vmem>>, vector<384x128xbf16>
    %cst_34 = arith.constant dense<0.000000e+00> : vector<8x128xf32>
    %74 = tpu.matmul %72, %73, %cst_34 {dimension_numbers = #tpu.dot_dimension_numbers<[1], [0], [0], [1], [0, 0, 1, 1], [], []>} : vector<8x384xbf16>, vector<384x128xbf16>, vector<8x128xf32> -> vector<8x128xf32>
    %c0_35 = arith.constant 0 : index
    %c0_36 = arith.constant 0 : index
    %75 = vector.load %arg11[%c0_35, %c0_36] : memref<1x128xf32, #tpu.memory_space<vmem>>, vector<1x128xf32>
    %76 = vector.broadcast %75 : vector<1x128xf32> to vector<8x128xf32>
    %77 = arith.addf %74, %76 : vector<8x128xf32>
    %c0_37 = arith.constant 0 : index
    %c0_38 = arith.constant 0 : index
    %78 = vector.load %arg12[%c0_37, %c0_38] : memref<8x128xf32, #tpu.memory_space<vmem>>, vector<8x128xf32>
    tpu.vector_store %arg12[%c0_37, %c0_38], %77 {strides = array<i32>} : memref<8x128xf32, #tpu.memory_space<vmem>>, vector<8x128xf32>,
    return
  }
  func.func @transform_0(%arg0: i32) -> (i32, i32) {
    %c0_i32 = arith.constant 0 : i32
    %c0_i32_0 = arith.constant 0 : i32
    return %arg0, %c0_i32 : i32, i32
  }
  func.func @transform_1(%arg0: i32) -> (i32, i32) {
    %c0_i32 = arith.constant 0 : i32
    %c0_i32_0 = arith.constant 0 : i32
    %c0_i32_1 = arith.constant 0 : i32
    return %c0_i32, %c0_i32_0 : i32, i32
  }
  func.func @transform_2(%arg0: i32) -> (i32, i32) {
    %c0_i32 = arith.constant 0 : i32
    %c0_i32_0 = arith.constant 0 : i32
    %c0_i32_1 = arith.constant 0 : i32
    return %c0_i32, %c0_i32_0 : i32, i32
  }
  func.func @transform_3(%arg0: i32) -> (i32, i32) {
    %c0_i32 = arith.constant 0 : i32
    %c0_i32_0 = arith.constant 0 : i32
    %c0_i32_1 = arith.constant 0 : i32
    return %c0_i32, %c0_i32_0 : i32, i32
  }
  func.func @transform_4(%arg0: i32) -> (i32, i32) {
    %c0_i32 = arith.constant 0 : i32
    %c0_i32_0 = arith.constant 0 : i32
    %c0_i32_1 = arith.constant 0 : i32
    return %c0_i32, %c0_i32_0 : i32, i32
  }
  func.func @transform_5(%arg0: i32) -> (i32, i32) {
    %c0_i32 = arith.constant 0 : i32
    %c0_i32_0 = arith.constant 0 : i32
    %c0_i32_1 = arith.constant 0 : i32
    return %c0_i32, %c0_i32_0 : i32, i32
  }
  func.func @transform_6(%arg0: i32) -> (i32, i32) {
    %c0_i32 = arith.constant 0 : i32
    %c0_i32_0 = arith.constant 0 : i32
    %c0_i32_1 = arith.constant 0 : i32
    return %c0_i32, %c0_i32_0 : i32, i32
  }
  func.func @transform_7(%arg0: i32) -> (i32, i32) {
    %c0_i32 = arith.constant 0 : i32
    %c0_i32_0 = arith.constant 0 : i32
    %c0_i32_1 = arith.constant 0 : i32
    return %c0_i32, %c0_i32_0 : i32, i32
  }
  func.func @transform_8(%arg0: i32) -> (i32, i32) {
    %c0_i32 = arith.constant 0 : i32
    %c0_i32_0 = arith.constant 0 : i32
    %c0_i32_1 = arith.constant 0 : i32
    return %c0_i32, %c0_i32_0 : i32, i32
  }
  func.func @transform_9(%arg0: i32) -> (i32, i32) {
    %c0_i32 = arith.constant 0 : i32
    %c0_i32_0 = arith.constant 0 : i32
    %c0_i32_1 = arith.constant 0 : i32
    return %c0_i32, %c0_i32_0 : i32, i32
  }
  func.func @transform_10(%arg0: i32) -> (i32, i32) {
    %c0_i32 = arith.constant 0 : i32
    %c0_i32_0 = arith.constant 0 : i32
    %c0_i32_1 = arith.constant 0 : i32
    return %c0_i32, %c0_i32_0 : i32, i32
  }
  func.func @transform_11(%arg0: i32) -> (i32, i32) {
    %c0_i32 = arith.constant 0 : i32
    %c0_i32_0 = arith.constant 0 : i32
    return %arg0, %c0_i32 : i32, i32
  }
}

</mosaic_0001>

<bundles_post_ra>
// kernel: tpu_custom_call.1
= control target key start
LH: loop header
LB: loop body
LE: loop exit
PB: predicated region body
PF: predicated region fallthrough
CT: control target
= control target key end

     0   :  { %16 = vsyncpa [#allocation3], 0  ;;  %s2584_s0 = inlined_call_operand.hbm [shape: f32[8,40], index: 0, kind: input, shape index: {}]   ;;  %s2585_s1 = inlined_call_operand.hbm [shape: bf16[40,896], index: 1, kind: input, shape index: {}]   ;;  %s2586_s2 = inlined_call_operand.hbm [shape: f32[1,896], index: 2, kind: input, shape index: {}]   ;;  %s2587_s3 = inlined_call_operand.vmem [shape: f32[1,512], index: 3, kind: input, shape index: {}]   ;;  %s2588_s4 = inlined_call_operand.hbm [shape: f32[1,512], index: 4, kind: input, shape index: {}]   ;;  %s2589_s5 = inlined_call_operand.hbm [shape: bf16[512,384], index: 5, kind: input, shape index: {}]   ;;  %s2590_s6 = inlined_call_operand.vmem [shape: f32[1,384], index: 6, kind: input, shape index: {}]   ;;  %s2591_s7 = inlined_call_operand.vmem [shape: f32[1,384], index: 7, kind: input, shape index: {}]   ;;  %s2592_s8 = inlined_call_operand.vmem [shape: f32[1,384], index: 8, kind: input, shape index: {}]   ;;  %s2593_s9 = inlined_call_operand.hbm [shape: bf16[384,128], index: 9, kind: input, shape index: {}]   ;;  %s2594_s10 = inlined_call_operand.vmem [shape: f32[1,128], index: 10, kind: input, shape index: {}]   ;;  %s2595_s11 = inlined_call_operand.hbm [shape: f32[8,128], index: 11, kind: output, shape index: {}]  }
   0x1   :  { %17 = vsyncpa [#allocation6], 0 }
   0x2   :  { %18 = vsyncpa [#allocation9], 0 }
   0x3   :  { %19 = vsyncpa [#allocation12], 0 }
   0x4   :  { %20 = vsyncpa [#allocation4], 0  ;;  %s2340_s17 = smov [#allocation5]  }
   0x5   :  { %s36_s18 = sshll.u32 %s2340_s17, 4  ;;  %s37_s18 = int_to_ptr.vmem [resolvable:$true] %s36_s18 }
   0x6   :  { %s2198_s19 = scalar_lea.vmem %s37_s18, 2240  ;;  %p2203_p1 = scmp.lt.s32.totalorder %s37_s18, %s37_s18 }
   0x7   :  { %p2199_p0 = scmp.ne.s32.totalorder %s37_s18, %s2198_s19  ;;  %p2204_p2 = scmp.lt.s32.totalorder %s2198_s19, %s2198_s19 }
   0x9   :  { %p2205_p3 = por %p2204_p2, %p2203_p1 }
   0xb   :  { %p2206_p4 = pnand %p2205_p3, %p2199_p0 }
   0xd   :  { %2209 = shalt.err (!%p2206_p4)
}
   0xe   :  { %s2341_s20 = smov 448   ;;  %s2342_s21 = smov 28  }
   0xf   :  { %42 = dma.hbm_to_vmem [thread:$0]  %s2585_s1, 2240, %s37_s18, [#allocation6], %s2341_s20, %s2341_s20, %s2342_s21  }
  0x10   :  { %s2343_s24 = smov [#allocation8]   ;;  %s2344_s26 = smov [#allocation2]  }
  0x11   :  { %s61_s25 = sshll.u32 %s2343_s24, 4  ;;  %s27_s27 = sshll.u32 %s2344_s26, 4  ;;  %s62_s25 = int_to_ptr.vmem [resolvable:$true] %s61_s25  ;;  %s28_s27 = int_to_ptr.vmem [resolvable:$true] %s27_s27 }
  0x12   :  { %s2218_s28 = scalar_lea.vmem %s62_s25, 64  ;;  %p2223_p6 = scmp.lt.s32.totalorder %s62_s25, %s62_s25 }
  0x13   :  { %p2219_p5 = scmp.ne.s32.totalorder %s62_s25, %s2218_s28  ;;  %p2224_p7 = scmp.lt.s32.totalorder %s2218_s28, %s2218_s28 }
  0x15   :  { %p2225_p8 = por %p2224_p7, %p2223_p6 }
  0x17   :  { %p2226_p9 = pnand %p2225_p8, %p2219_p5 }
  0x19   :  { %2229 = shalt.err (!%p2226_p9)
}
  0x1a   :  { %64 = dma.hbm_to_vmem [thread:$0]  %s2588_s4, 64, %s62_s25, [#allocation9]  }
  0x1b   :  { %s2238_s12 = scalar_lea.vmem %s28_s27, 128  ;;  %p2243_p11 = scmp.lt.s32.totalorder %s28_s27, %s28_s27 }
  0x1c   :  { %p2239_p10 = scmp.ne.s32.totalorder %s28_s27, %s2238_s12  ;;  %p2244_p12 = scmp.lt.s32.totalorder %s2238_s12, %s2238_s12 }
  0x1e   :  { %p2245_p13 = por %p2244_p12, %p2243_p11 }
  0x20   :  { %p2246_p0 = pnand %p2245_p13, %p2239_p10 }
  0x22   :  { %2249 = shalt.err (!%p2246_p0)
}
  0x23   :  { %30 = dma.hbm_to_vmem [thread:$0]  %s2584_s0, 128, %s28_s27, [#allocation3]  }
  0x24   :  { %s2345_s14 = smov [#allocation7]   ;;  %s2346_s16 = smov [#allocation10]  }
  0x25   :  { %s49_s15 = sshll.u32 %s2345_s14, 4  ;;  %s70_s17 = sshll.u32 %s2346_s16, 4  ;;  %s50_s15 = int_to_ptr.vmem [resolvable:$true] %s49_s15  ;;  %s71_s17 = int_to_ptr.vmem [resolvable:$true] %s70_s17 }
  0x26   :  { %s2258_s18 = scalar_lea.vmem %s50_s15, 112  ;;  %s2262_s4 = scalar_lea.vmem %s50_s15, 128 }
  0x27   :  { %p2259_p1 = scmp.ne.s32.totalorder %s50_s15, %s2258_s18  ;;  %p2263_p2 = scmp.lt.s32.totalorder %s50_s15, %s50_s15 }
  0x28   :  { %p2264_p3 = scmp.lt.s32.totalorder %s2262_s4, %s2258_s18 }
  0x2a   :  { %p2265_p4 = por %p2264_p3, %p2263_p2 }
  0x2c   :  { %p2266_p5 = pnand %p2265_p4, %p2259_p1 }
  0x2e   :  { %2269 = shalt.err (!%p2266_p5)
}
  0x2f   :  { %52 = dma.hbm_to_vmem [thread:$0]  %s2586_s2, 112, %s50_s15, [#allocation6]  }
  0x30   :  { %s2278_s21 = scalar_lea.vmem %s71_s17, 12288  ;;  %p2283_p7 = scmp.lt.s32.totalorder %s71_s17, %s71_s17 }
  0x31   :  { %p2279_p6 = scmp.ne.s32.totalorder %s71_s17, %s2278_s21  ;;  %p2284_p8 = scmp.lt.s32.totalorder %s2278_s21, %s2278_s21 }
  0x33   :  { %p2285_p9 = por %p2284_p8, %p2283_p7 }
  0x35   :  { %p2286_p10 = pnand %p2285_p9, %p2279_p6 }
  0x37   :  { %2289 = shalt.err (!%p2286_p10)
}
  0x38   :  { %s2347_s0 = smov 192   ;;  %s2348_s22 = smov 12  }
  0x39   :  { %76 = dma.hbm_to_vmem [thread:$0]  %s2589_s5, 12288, %s71_s17, [#allocation9], %s2347_s0, %s2347_s0, %s2348_s22  }
  0x3a   :  { %s2349_s25 = smov [#allocation11]  }
  0x3b   :  { %s88_s26 = sshll.u32 %s2349_s25, 4  ;;  %s89_s26 = int_to_ptr.vmem [resolvable:$true] %s88_s26 }
  0x3c   :  { %s2298_s27 = scalar_lea.vmem %s89_s26, 3072  ;;  %p2303_p12 = scmp.lt.s32.totalorder %s89_s26, %s89_s26 }
  0x3d   :  { %p2299_p11 = scmp.ne.s32.totalorder %s89_s26, %s2298_s27  ;;  %p2304_p13 = scmp.lt.s32.totalorder %s2298_s27, %s2298_s27 }
  0x3f   :  { %p2305_p0 = por %p2304_p13, %p2303_p12 }
  0x41   :  { %p2306_p1 = pnand %p2305_p0, %p2299_p11 }
  0x43   :  { %2309 = shalt.err (!%p2306_p1)
}
  0x44   :  { %s2350_s2 = smov 64   ;;  %s2351_s28 = smov 4  }
  0x45   :  { %94 = dma.hbm_to_vmem [thread:$0]  %s2593_s9, 3072, %s89_s26, [#allocation12], %s2350_s2, %s2350_s2, %s2351_s28  }
  0x46   :  { %2330 = dma.done.wait [#allocation3], 128  }
  0x47   :  { %2331 = vsyncadd [#allocation3], 4294967168 }
  0x48   :  { %2332 = dma.done.wait [#allocation6], 2352  }
  0x49   :  { %2333 = vsyncadd [#allocation6], 4294964944 }
  0x4a   :  { %2334 = dma.done.wait [#allocation9], 12352  }
  0x4b   :  { %2335 = vsyncadd [#allocation9], 4294954944 }
  0x4c   :  { %2336 = dma.done.wait [#allocation12], 3072  }
  0x4d   :  { %2337 = vsyncadd [#allocation12], 4294964224  ;;  %v2352_v0 = vmov 0   ;;  %v134_v1 = vld [vmem:[#allocation5 + $0x70] sm:$0xff]  ;;  %vm269_vm0 = vcmask 1043456   ;;  %v135_v2 = vld [vmem:[#allocation5 + $0x78] sm:$0xff]  ;;  %v140_v60 = vlaneseq }
  0x4e   :  { %323 = vmatprep.mubr.bf16.mxu0 %v2352_v0  ;;  %364 = vmatprep.mubr.bf16.mxu1 %v2352_v0  ;;  %v1748_v3 = vcombine.high %v134_v1, %v134_v1  ;;  %v1750_v4 = vcombine.high %v135_v2, %v135_v2  ;;  %v1747_v5 = vcombine.low %v134_v1, %v134_v1  ;;  %v2011_v7 = vld [vmem:[#allocation5 + $0x3c] ss:$28 sps:$4 sm:$0xff]   ;;  %v2013_v8 = vld [vmem:[#allocation5 + $0x44] ss:$28 sps:$4 sm:$0xff]   ;;  %v2019_v14 = vld [vmem:[#allocation5 + $0xc] ss:$28 sps:$4 sm:$0xff]  }
  0x4f   :  { %v1749_v6 = vcombine.low %v135_v2, %v135_v2  ;;  %v2015_v11 = vld [vmem:[#allocation5 + $0x38] ss:$28 sps:$4 sm:$0xff]   ;;  %v2016_v12 = vld [vmem:[#allocation5 + $0x40] ss:$28 sps:$4 sm:$0xff]   ;;  %v2022_v16 = vld [vmem:[#allocation5 + $0x8] ss:$28 sps:$4 sm:$0xff]  }
  0x50   :  { %1754 = vmatprep.subr.msk.bf16.mxu0 %vm269_vm0, %v1748_v3  ;;  %1756 = vmatprep.subr.msk.bf16.mxu1 %vm269_vm0, %v1750_v4  ;;  %v271_v9 = vsel %vm269_vm0, %v1747_v5, 0  ;;  %v2017_v13 = vld [vmem:[#allocation5 + $0x4] ss:$28 sps:$4 sm:$0xff]   ;;  %v116_v17 = vld [vmem:[#allocation2] sm:$0xff]  ;;  %vm265_vm1 = vcmask 326656   ;;  %v2353_v23 = vmov 0.0  }
  0x51   :  { %v277_v10 = vsel %vm269_vm0, %v1749_v6, 0  ;;  %302 = vmatpush1.bf16.msra.mxu0 %v271_v9  ;;  %v2021_v15 = vld [vmem:[#allocation5] ss:$28 sps:$4 sm:$0xff]   ;;  %v117_v18 = vpack.c.bf16 %v116_v17, %v116_v17  ;;  %v2025_v20 = vld [vmem:[#allocation5 + $0x88] ss:$0 sps:$4 sm:$0xff]   ;;  %vm2354_vm2 = vmmov 0  }
  0x52   :  { %343 = vmatpush1.bf16.msra.mxu1 %v277_v10  ;;  %303 = vmatprep.subr.bf16.mxu0 %v2011_v7  ;;  %v136_v19 = vld [vmem:[#allocation5 + $0x80] sm:$0xff]  ;;  %v2028_v24 = vld [vmem:[#allocation5 + $0x4c] ss:$28 sps:$4 sm:$0xff]   ;;  %v289_v25 = vsel %vm269_vm0, %v2025_v20, 0  ;;  %v2032_v29 = vld [vmem:[#allocation5 + $0x14] ss:$28 sps:$4 sm:$0xff]  }
  0x53   :  { %344 = vmatprep.subr.bf16.mxu1 %v2013_v8  ;;  %v1752_v21 = vcombine.high %v136_v19, %v136_v19  ;;  %v1751_v22 = vcombine.low %v136_v19, %v136_v19  ;;  %v2029_v27 = vld [vmem:[#allocation5 + $0x50] ss:$28 sps:$4 sm:$0xff]   ;;  %v2026_v28 = vld [vmem:[#allocation5 + $0x48] ss:$28 sps:$4 sm:$0xff]   ;;  %v2033_v30 = vld [vmem:[#allocation5 + $0x18] ss:$28 sps:$4 sm:$0xff]  }
  0x54   :  { %v2030_v31 = vld [vmem:[#allocation5 + $0x10] ss:$28 sps:$4 sm:$0xff]   ;;  %v2043_v38 = vld [vmem:[#allocation10 + $0x210] ss:$12 sps:$4 sm:$0xff]   ;;  %v2055_v46 = vld [vmem:[#allocation10 + $0x1e0] ss:$12 sps:$4 sm:$0xff]  }
  0x55   :  { %304 = vmatpush1.bf16.msra.mxu0 %v2015_v11  ;;  %v283_v26 = vsel %vm269_vm0, %v1751_v22, 0  ;;  %v2039_v32 = vld [vmem:[#allocation10 + $0x22c] ss:$12 sps:$4 sm:$0xff]   ;;  %v2037_v34 = vld [vmem:[#allocation10 + $0x228] ss:$12 sps:$4 sm:$0xff]   ;;  %v2450_v61 = vshrl.u32 %v140_v60, 7 }
  0x56   :  { %345 = vmatpush1.bf16.msra.mxu1 %v2016_v12  ;;  %305 = vmatprep.subr.bf16.mxu0 %v2017_v13  ;;  %v2036_v33 = vld [vmem:[#allocation10 + $0xac] ss:$12 sps:$4 sm:$0xff]   ;;  %v2034_v35 = vld [vmem:[#allocation10 + $0xa8] ss:$12 sps:$4 sm:$0xff]   ;;  %v2040_v39 = vld [vmem:[#allocation10 + $0x90] ss:$12 sps:$4 sm:$0xff]  }
  0x57   :  { %346 = vmatprep.subr.bf16.mxu1 %v2019_v14  ;;  %v2045_v36 = vld [vmem:[#allocation10 + $0x214] ss:$12 sps:$4 sm:$0xff]   ;;  %v2051_v40 = vld [vmem:[#allocation10 + $0x1fc] ss:$12 sps:$4 sm:$0xff]   ;;  %v2049_v42 = vld [vmem:[#allocation10 + $0x1f8] ss:$12 sps:$4 sm:$0xff]  }
  0x58   :  { %v2042_v37 = vld [vmem:[#allocation10 + $0x94] ss:$12 sps:$4 sm:$0xff]   ;;  %v2048_v41 = vld [vmem:[#allocation10 + $0x7c] ss:$12 sps:$4 sm:$0xff]   ;;  %v2046_v43 = vld [vmem:[#allocation10 + $0x78] ss:$12 sps:$4 sm:$0xff]  }
  0x59   :  { %306 = vmatpush1.bf16.msra.mxu0 %v2021_v15  ;;  %v2057_v44 = vld [vmem:[#allocation10 + $0x1e4] ss:$12 sps:$4 sm:$0xff]   ;;  %v2052_v47 = vld [vmem:[#allocation10 + $0x60] ss:$12 sps:$4 sm:$0xff]   ;;  %v2061_v50 = vld [vmem:[#allocation10 + $0x1c8] ss:$12 sps:$4 sm:$0xff]  }
  0x5a   :  { %347 = vmatpush1.bf16.msra.mxu1 %v2022_v16  ;;  %1758 = vmatprep.subr.msk.bf16.mxu0 %vm269_vm0, %v1752_v21  ;;  %v2054_v45 = vld [vmem:[#allocation10 + $0x64] ss:$12 sps:$4 sm:$0xff]   ;;  %v2063_v48 = vld [vmem:[#allocation10 + $0x1cc] ss:$12 sps:$4 sm:$0xff]   ;;  %v2058_v51 = vld [vmem:[#allocation10 + $0x48] ss:$12 sps:$4 sm:$0xff]  }
  0x5b   :  { %1961 = vmatprep.subr.bf16.mxu1 %v2353_v23  ;;  %v2060_v49 = vld [vmem:[#allocation10 + $0x4c] ss:$12 sps:$4 sm:$0xff]   ;;  %v2069_v52 = vld [vmem:[#allocation10 + $0x1b4] ss:$12 sps:$4 sm:$0xff]   ;;  %v2067_v54 = vld [vmem:[#allocation10 + $0x1b0] ss:$12 sps:$4 sm:$0xff]  }
  0x5c   :  { %1755 = vmatmul.mubr.msk.bf16.vlgmr.msra.gmra.mxu0 %vm265_vm1, %v117_v18  ;;  %v2066_v53 = vld [vmem:[#allocation10 + $0x34] ss:$12 sps:$4 sm:$0xff]   ;;  %v2064_v55 = vld [vmem:[#allocation10 + $0x30] ss:$12 sps:$4 sm:$0xff]   ;;  %v2073_v58 = vld [vmem:[#allocation10 + $0x198] ss:$12 sps:$4 sm:$0xff]  }
  0x5d   :  { %1757 = vmatmul.mubr.msk.bf16.vlgmr.msra.gmra.mxu1 %vm265_vm1, %v117_v18  ;;  %405 = vmatprep.mubr.bf16.mxu0 %v2352_v0  ;;  %v2075_v56 = vld [vmem:[#allocation10 + $0x19c] ss:$12 sps:$4 sm:$0xff]   ;;  %v2070_v59 = vld [vmem:[#allocation10 + $0x18] ss:$12 sps:$4 sm:$0xff]   ;;  %v2453_v62 = vsub.s32 0, %v2450_v61  ;;  %v2456_v63 = vsub.s32 2, %v2450_v61 }
  0x5e   :  { %1962 = vmatpush3.bf16.msra.mxu1 %v289_v25  ;;  %384 = vmatpush1.bf16.msra.mxu0 %v283_v26  ;;  %v2072_v57 = vld [vmem:[#allocation10 + $0x1c] ss:$12 sps:$4 sm:$0xff]   ;;  %v2458_v0 = vld [vmem:[#allocation7] sm:$0xff]  ;;  %v2461_v1 = vsub.s32 1, %v2450_v61  ;;  %v2470_v5 = vsub.s32 3, %v2450_v61  ;;  %s2355_s15 = smov [#allocation13]  }
  0x5f   :  { %1963 = vmatprep.subr.bf16.mxu1 %v2353_v23  ;;  %385 = vmatprep.subr.bf16.mxu0 %v2028_v24  ;;  %v143_v2 = vrot.slane %v2458_v0, %v2453_v62  ;;  %v151_v3 = vrot.slane %v2458_v0, %v2456_v63  ;;  %v2118_v60 = vld [vmem:[#allocation10 + $0xd8] ss:$12 sps:$4 sm:$0xff]   ;;  %s1721_s16 = sshll.u32 %s2355_s15, 4  ;;  %s1722_s16 = int_to_ptr.vmem [resolvable:$true] %s1721_s16 }
  0x60   :  { %1967 = vmatprep.mubr.msk.bf16.mxu1 %vm2354_vm2, %v2353_v23  ;;  %v147_v4 = vrot.slane %v2458_v0, %v2461_v1  ;;  %v155_v13 = vrot.slane %v2458_v0, %v2470_v5  ;;  %s2310_s17 = scalar_lea.vmem %s1722_s16, 128  ;;  %p2315_p3 = scmp.lt.s32.totalorder %s1722_s16, %s1722_s16 }
  0x61   :  { %p2311_p2 = scmp.ne.s32.totalorder %s1722_s16, %s2310_s17  ;;  %p2316_p4 = scmp.lt.s32.totalorder %s2310_s17, %s2310_s17 }
  0x62   :  { %1964 = vmatpush3.bf16.msra.mxu1 %v2029_v27  ;;  %386 = vmatpush1.bf16.msra.mxu0 %v2026_v28 }
  0x63   :  { %1965 = vmatprep.subr.bf16.mxu1 %v2353_v23  ;;  %387 = vmatprep.subr.bf16.mxu0 %v2032_v29  ;;  %p2317_p5 = por %p2316_p4, %p2315_p3 }
  0x65   :  { %p2318_p6 = pnand %p2317_p5, %p2311_p2 }
  0x66   :  { %1966 = vmatpush3.bf16.msra.mxu1 %v2033_v30  ;;  %388 = vmatpush1.bf16.msra.mxu0 %v2030_v31  ;;  %v2078_v30 = vld [vmem:[#allocation10 + $0x4] ss:$12 sps:$4 sm:$0xff]  }
  0x67   :  { %1241 = vmatprep.subr.bf16.mxu1 %v2039_v32  ;;  %1200 = vmatprep.subr.bf16.mxu0 %v2036_v33  ;;  %v2081_v31 = vld [vmem:[#allocation10 + $0x184] ss:$12 sps:$4 sm:$0xff]   ;;  %v2076_v32 = vld [vmem:[#allocation10] ss:$12 sps:$4 sm:$0xff]  }
  0x68   :  { %v2079_v33 = vld [vmem:[#allocation10 + $0x180] ss:$12 sps:$4 sm:$0xff]  }
  0x69   :  { %1968 = vmatmul.mubr.msk.bf16.vlgmr.msra.gmra.mxu1 %vm265_vm1, %v117_v18  ;;  %1759 = vmatmul.mubr.msk.bf16.vlgmr.msra.gmra.mxu0 %vm265_vm1, %v117_v18 }
  0x6a   :  { %1242 = vmatpush1.bf16.msra.mxu1 %v2037_v34  ;;  %1201 = vmatpush1.bf16.msra.mxu0 %v2034_v35  ;;  %v2084_v34 = vld [vmem:[#allocation10 + $0x16c] ss:$12 sps:$4 sm:$0xff]  }
  0x6b   :  { %1243 = vmatprep.subr.bf16.mxu1 %v2045_v36  ;;  %1202 = vmatprep.subr.bf16.mxu0 %v2042_v37  ;;  %v2087_v35 = vld [vmem:[#allocation10 + $0x2ec] ss:$12 sps:$4 sm:$0xff]   ;;  %v2082_v36 = vld [vmem:[#allocation10 + $0x168] ss:$12 sps:$4 sm:$0xff]  }
  0x6c   :  { %v2085_v37 = vld [vmem:[#allocation10 + $0x2e8] ss:$12 sps:$4 sm:$0xff]  }
  0x6e   :  { %1244 = vmatpush1.bf16.msra.mxu1 %v2043_v38  ;;  %1203 = vmatpush1.bf16.msra.mxu0 %v2040_v39  ;;  %v2090_v38 = vld [vmem:[#allocation10 + $0x154] ss:$12 sps:$4 sm:$0xff]  }
  0x6f   :  { %1245 = vmatprep.subr.bf16.mxu1 %v2051_v40  ;;  %1204 = vmatprep.subr.bf16.mxu0 %v2048_v41  ;;  %v2093_v39 = vld [vmem:[#allocation10 + $0x2d4] ss:$12 sps:$4 sm:$0xff]   ;;  %v2088_v40 = vld [vmem:[#allocation10 + $0x150] ss:$12 sps:$4 sm:$0xff]  }
  0x70   :  { %v2091_v41 = vld [vmem:[#allocation10 + $0x2d0] ss:$12 sps:$4 sm:$0xff]  }
  0x72   :  { %1246 = vmatpush1.bf16.msra.mxu1 %v2049_v42  ;;  %1205 = vmatpush1.bf16.msra.mxu0 %v2046_v43  ;;  %v2096_v42 = vld [vmem:[#allocation10 + $0x13c] ss:$12 sps:$4 sm:$0xff]  }
  0x73   :  { %1247 = vmatprep.subr.bf16.mxu1 %v2057_v44  ;;  %1206 = vmatprep.subr.bf16.mxu0 %v2054_v45  ;;  %v2099_v43 = vld [vmem:[#allocation10 + $0x2bc] ss:$12 sps:$4 sm:$0xff]   ;;  %v2094_v44 = vld [vmem:[#allocation10 + $0x138] ss:$12 sps:$4 sm:$0xff]  }
  0x74   :  { %v2097_v45 = vld [vmem:[#allocation10 + $0x2b8] ss:$12 sps:$4 sm:$0xff]  }
  0x76   :  { %1248 = vmatpush1.bf16.msra.mxu1 %v2055_v46  ;;  %1207 = vmatpush1.bf16.msra.mxu0 %v2052_v47  ;;  %v2102_v46 = vld [vmem:[#allocation10 + $0x124] ss:$12 sps:$4 sm:$0xff]   ;;  %v2100_v47 = vld [vmem:[#allocation10 + $0x120] ss:$12 sps:$4 sm:$0xff]  }
  0x77   :  { %1249 = vmatprep.subr.bf16.mxu1 %v2063_v48  ;;  %1208 = vmatprep.subr.bf16.mxu0 %v2060_v49  ;;  %v2103_v48 = vld [vmem:[#allocation10 + $0x2a0] ss:$12 sps:$4 sm:$0xff]   ;;  %v2105_v49 = vld [vmem:[#allocation10 + $0x2a4] ss:$12 sps:$4 sm:$0xff]  }
  0x7a   :  { %1250 = vmatpush1.bf16.msra.mxu1 %v2061_v50  ;;  %1209 = vmatpush1.bf16.msra.mxu0 %v2058_v51  ;;  %v2108_v50 = vld [vmem:[#allocation10 + $0x10c] ss:$12 sps:$4 sm:$0xff]  }
  0x7b   :  { %1251 = vmatprep.subr.bf16.mxu1 %v2069_v52  ;;  %1210 = vmatprep.subr.bf16.mxu0 %v2066_v53  ;;  %v2111_v51 = vld [vmem:[#allocation10 + $0x28c] ss:$12 sps:$4 sm:$0xff]   ;;  %v2106_v52 = vld [vmem:[#allocation10 + $0x108] ss:$12 sps:$4 sm:$0xff]  }
  0x7c   :  { %v2109_v53 = vld [vmem:[#allocation10 + $0x288] ss:$12 sps:$4 sm:$0xff]  }
  0x7e   :  { %1252 = vmatpush1.bf16.msra.mxu1 %v2067_v54  ;;  %1211 = vmatpush1.bf16.msra.mxu0 %v2064_v55  ;;  %v2114_v54 = vld [vmem:[#allocation10 + $0xf4] ss:$12 sps:$4 sm:$0xff]  }
  0x7f   :  { %1253 = vmatprep.subr.bf16.mxu1 %v2075_v56  ;;  %1212 = vmatprep.subr.bf16.mxu0 %v2072_v57  ;;  %v2117_v55 = vld [vmem:[#allocation10 + $0x274] ss:$12 sps:$4 sm:$0xff]   ;;  %v2112_v56 = vld [vmem:[#allocation10 + $0xf0] ss:$12 sps:$4 sm:$0xff]  }
  0x80   :  { %v2115_v57 = vld [vmem:[#allocation10 + $0x270] ss:$12 sps:$4 sm:$0xff]  }
  0x82   :  { %1254 = vmatpush1.bf16.msra.mxu1 %v2073_v58  ;;  %1213 = vmatpush1.bf16.msra.mxu0 %v2070_v59  ;;  %v2120_v58 = vld [vmem:[#allocation10 + $0xdc] ss:$12 sps:$4 sm:$0xff]  }
  0x83   :  { %1214 = vmatprep.subr.bf16.mxu0 %v2078_v30  ;;  %1255 = vmatprep.subr.bf16.mxu1 %v2081_v31  ;;  %v2123_v59 = vld [vmem:[#allocation10 + $0x25c] ss:$12 sps:$4 sm:$0xff]   ;;  %v454_v31 = vld [vmem:[%s2587_s3] sm:$0xf] }
  0x86   :  { %1215 = vmatpush1.bf16.msra.mxu0 %v2076_v32  ;;  %1256 = vmatpush1.bf16.msra.mxu1 %v2079_v33  ;;  %v455_v32 = vld [vmem:[#allocation8] sm:$0xf]  ;;  %v493_v33 = vrot.slane %v454_v31, %v2461_v1 }
  0x87   :  { %1216 = vmatprep.subr.bf16.mxu0 %v2084_v34  ;;  %1257 = vmatprep.subr.bf16.mxu1 %v2087_v35  ;;  %v501_v34 = vrot.slane %v454_v31, %v2470_v5  ;;  %v489_v35 = vrot.slane %v454_v31, %v2453_v62 }
  0x8a   :  { %1217 = vmatpush2.bf16.msra.mxu0 %v2082_v36  ;;  %1258 = vmatpush2.bf16.msra.mxu1 %v2085_v37  ;;  %v497_v36 = vrot.slane %v454_v31, %v2456_v63  ;;  %v2152_v31 = vld [vmem:[#allocation10 + $0x38] ss:$12 sps:$4 sm:$0xff]  }
  0x8b   :  { %1218 = vmatprep.subr.bf16.mxu0 %v2090_v38  ;;  %1259 = vmatprep.subr.bf16.mxu1 %v2093_v39 }
  0x8e   :  { %1219 = vmatpush2.bf16.msra.mxu0 %v2088_v40  ;;  %1260 = vmatpush2.bf16.msra.mxu1 %v2091_v41 }
  0x8f   :  { %1220 = vmatprep.subr.bf16.mxu0 %v2096_v42  ;;  %1261 = vmatprep.subr.bf16.mxu1 %v2099_v43  ;;  %v518_v42 = vrot.slane %v455_v32, %v2461_v1  ;;  %v526_v43 = vrot.slane %v455_v32, %v2470_v5 }
  0x92   :  { %1221 = vmatpush2.bf16.msra.mxu0 %v2094_v44  ;;  %1262 = vmatpush2.bf16.msra.mxu1 %v2097_v45  ;;  %v514_v44 = vrot.slane %v455_v32, %v2453_v62  ;;  %v522_v45 = vrot.slane %v455_v32, %v2456_v63  ;;  %v2153_v32 = vld [vmem:[#allocation10 + $0x1b8] ss:$12 sps:$4 sm:$0xff]  }
  0x93   :  { %1222 = vmatprep.subr.bf16.mxu0 %v2102_v46  ;;  %1263 = vmatprep.subr.bf16.mxu1 %v2105_v49 }
  0x96   :  { %1223 = vmatpush2.bf16.msra.mxu0 %v2100_v47  ;;  %1264 = vmatpush2.bf16.msra.mxu1 %v2103_v48 }
  0x97   :  { %1224 = vmatprep.subr.bf16.mxu0 %v2108_v50  ;;  %1265 = vmatprep.subr.bf16.mxu1 %v2111_v51 }
  0x9a   :  { %1225 = vmatpush2.bf16.msra.mxu0 %v2106_v52  ;;  %1266 = vmatpush2.bf16.msra.mxu1 %v2109_v53 }
  0x9b   :  { %1226 = vmatprep.subr.bf16.mxu0 %v2114_v54  ;;  %1267 = vmatprep.subr.bf16.mxu1 %v2117_v55 }
  0x9e   :  { %1227 = vmatpush2.bf16.msra.mxu0 %v2112_v56  ;;  %1268 = vmatpush2.bf16.msra.mxu1 %v2115_v57 }
  0x9f   :  { %1228 = vmatprep.subr.bf16.mxu0 %v2120_v58  ;;  %1269 = vmatprep.subr.bf16.mxu1 %v2123_v59 }
  0xa2   :  { %1229 = vmatpush2.bf16.msra.mxu0 %v2118_v60 }
 0x11c   :  { %v325_v6 = vpop.f32.mrf.mxu0 }
 0x11d   :  { %v366_v7 = vpop.f32.mrf.mxu1  ;;  %v2472_v8 = vadd.f32 %v325_v6, %v143_v2  ;;  %v2121_v2 = vld [vmem:[#allocation10 + $0x258] ss:$12 sps:$4 sm:$0xff]   ;;  %v2124_v6 = vld [vmem:[#allocation10 + $0xc0] ss:$12 sps:$4 sm:$0xff]  }
 0x11e   :  { %v2474_v9 = vadd.f32 %v366_v7, %v151_v3  ;;  %v327_v10 = vpop.f32.mrf.mxu0  ;;  %v2126_v3 = vld [vmem:[#allocation10 + $0xc4] ss:$12 sps:$4 sm:$0xff]   ;;  %1270 = vmatpush2.bf16.msra.mxu1 %v2121_v2  ;;  %v2127_v7 = vld [vmem:[#allocation10 + $0x240] ss:$12 sps:$4 sm:$0xff]  }
 0x11f   :  { %v368_v11 = vpop.f32.mrf.mxu1  ;;  %v2476_v12 = vadd.f32 %v327_v10, %v147_v4  ;;  %v461_v16 = vmul.f32 %v2472_v8, %v2472_v8  ;;  %v2129_v4 = vld [vmem:[#allocation10 + $0x244] ss:$12 sps:$4 sm:$0xff]   ;;  %1230 = vmatprep.subr.bf16.mxu0 %v2126_v3 }
 0x120   :  { %v329_v14 = vpop.f32.mrf.mxu0  ;;  %v463_v17 = vmul.f32 %v2474_v9, %v2474_v9  ;;  %v2488_v22 = vadd.f32 %v368_v11, %v155_v13  ;;  %1271 = vmatprep.subr.bf16.mxu1 %v2129_v4  ;;  %1231 = vmatpush2.bf16.msra.mxu0 %v2124_v6  ;;  %v2130_v10 = vld [vmem:[#allocation10 + $0x170] ss:$12 sps:$4 sm:$0xff]   ;;  %v2134_v4 = vld [vmem:[#allocation10 + $0x158] ss:$12 sps:$4 sm:$0xff]  }
 0x121   :  { %v370_v15 = vpop.f32.mrf.mxu1  ;;  %v462_v18 = vmul.f32 %v2476_v12, %v2476_v12  ;;  %v456_v19 = vadd.f32 %v2476_v12, %v2472_v8  ;;  %v2131_v11 = vld [vmem:[#allocation10 + $0x2f0] ss:$12 sps:$4 sm:$0xff]   ;;  %1886 = vmatprep.subr.bf16.mxu0 %v2130_v10  ;;  %v2135_v6 = vld [vmem:[#allocation10 + $0x2d8] ss:$12 sps:$4 sm:$0xff]  }
 0x122   :  { %v330_v20 = vpop.f32.mrf.mxu0  ;;  %v464_v28 = vmul.f32 %v2488_v22, %v2488_v22  ;;  %1272 = vmatpush2.bf16.msra.mxu1 %v2127_v7  ;;  %v2132_v2 = vld [vmem:[#allocation10 + $0xb0] ss:$12 sps:$4 sm:$0xff]   ;;  %v2136_v7 = vld [vmem:[#allocation10 + $0x98] ss:$12 sps:$4 sm:$0xff]  }
 0x123   :  { %v371_v21 = vpop.f32.mrf.mxu1  ;;  %v457_v24 = vadd.f32 %v456_v19, %v2474_v9  ;;  %v465_v25 = vadd.f32 %v462_v18, %v461_v16  ;;  %1908 = vmatprep.subr.bf16.mxu1 %v2131_v11  ;;  %v2133_v3 = vld [vmem:[#allocation10 + $0x230] ss:$12 sps:$4 sm:$0xff]   ;;  %v2137_v10 = vld [vmem:[#allocation10 + $0x218] ss:$12 sps:$4 sm:$0xff]   ;;  %v2138_v11 = vld [vmem:[#allocation10 + $0x140] ss:$12 sps:$4 sm:$0xff]  }
 0x125   :  { %v458_v26 = vadd.f32 %v457_v24, %v2488_v22  ;;  %v466_v27 = vadd.f32 %v465_v25, %v463_v17 }
 0x127   :  { %459 = vadd.xlane.f32.xlu0 %v458_v26  ;;  %v467_v29 = vadd.f32 %v466_v27, %v464_v28 }
 0x129   :  { %v2494_v13 = vpop.f32.mrf.mxu1  ;;  %v2496_v14 = vpop.f32.mrf.mxu0 }
 0x12b   :  { %468 = vadd.xlane.f32.xlu0 %v467_v29  ;;  %v1969_v15 = vpop.f32.mrf.mxu1  ;;  %v2498_v16 = vpop.f32.mrf.mxu0 }
 0x12c   :  { %v2139_v15 = vld [vmem:[#allocation10 + $0x2c0] ss:$12 sps:$4 sm:$0xff]  }
 0x12d   :  { %v451_v17 = vpop.f32.mrf.mxu1  ;;  %v411_v18 = vpop.f32.mrf.mxu0 }
 0x12e   :  { %v2140_v17 = vld [vmem:[#allocation10 + $0x80] ss:$12 sps:$4 sm:$0xff]  }
 0x12f   :  { %v1970_v19 = vpop.f32.mrf.mxu1  ;;  %v412_v20 = vpop.f32.mrf.mxu0  ;;  %v2141_v18 = vld [vmem:[#allocation10 + $0x200] ss:$12 sps:$4 sm:$0xff]  }
 0x130   :  { %v2142_v19 = vld [vmem:[#allocation10 + $0x128] ss:$12 sps:$4 sm:$0xff]  }
 0x131   :  { %v2143_v20 = vld [vmem:[#allocation10 + $0x2a8] ss:$12 sps:$4 sm:$0xff]  }
 0x1b0   :  { %v460_v21 = vpop.xlane.xlu0 %459 }
 0x1b1   :  { %v470_v24 = vmul.f32 0.0025, %v460_v21  ;;  %v2144_v21 = vld [vmem:[#allocation10 + $0x68] ss:$12 sps:$4 sm:$0xff]  }
 0x1b3   :  { %v472_v26 = vmul.f32 %v470_v24, %v470_v24  ;;  %v475_v37 = vsub.f32 %v2472_v8, %v470_v24  ;;  %v477_v38 = vsub.f32 %v2474_v9, %v470_v24  ;;  %v476_v39 = vsub.f32 %v2476_v12, %v470_v24 }
 0x1b4   :  { %v469_v25 = vpop.xlane.xlu0 %468  ;;  %v478_v40 = vsub.f32 %v2488_v22, %v470_v24  ;;  %v2145_v24 = vld [vmem:[#allocation10 + $0x1e8] ss:$12 sps:$4 sm:$0xff]  }
 0x1b5   :  { %v471_v27 = vmul.f32 0.0025, %v469_v25  ;;  %v2146_v25 = vld [vmem:[#allocation10 + $0x110] ss:$12 sps:$4 sm:$0xff]  }
 0x1b7   :  { %v473_v28 = vsub.f32 %v471_v27, %v472_v26  ;;  %v2147_v26 = vld [vmem:[#allocation10 + $0x290] ss:$12 sps:$4 sm:$0xff]  }
 0x1b8   :  { %v2148_v27 = vld [vmem:[#allocation10 + $0x50] ss:$12 sps:$4 sm:$0xff]  }
 0x1b9   :  { %v474_v29 = vmax.f32 %v473_v28, 0.0  ;;  %v2149_v28 = vld [vmem:[#allocation10 + $0x1d0] ss:$12 sps:$4 sm:$0xff]  }
 0x1bb   :  { %v479_v30 = vadd.f32 1e-05, %v474_v29  ;;  %v2150_v29 = vld [vmem:[#allocation10 + $0xf8] ss:$12 sps:$4 sm:$0xff]  }
 0x1bd   :  { %2186 = vrsqrt.f32 %v479_v30  ;;  %v2151_v30 = vld [vmem:[#allocation10 + $0x278] ss:$12 sps:$4 sm:$0xff]  }
 0x1ca   :  { %v2187_v41 = vpop.eup %2186 }
 0x1cb   :  { %v482_v46 = vmul.f32 %v2187_v41, %v476_v39  ;;  %v484_v47 = vmul.f32 %v2187_v41, %v478_v40  ;;  %v481_v48 = vmul.f32 %v2187_v41, %v475_v37  ;;  %v483_v49 = vmul.f32 %v2187_v41, %v477_v38  ;;  %v2158_v37 = vld [vmem:[#allocation10 + $0xc8] ss:$12 sps:$4 sm:$0xff]  }
 0x1cc   :  { %v2159_v38 = vld [vmem:[#allocation10 + $0x248] ss:$12 sps:$4 sm:$0xff]  }
 0x1cd   :  { %v507_v8 = vmul.f32 %v493_v33, %v482_v46  ;;  %v509_v50 = vmul.f32 %v501_v34, %v484_v47  ;;  %v506_v9 = vmul.f32 %v489_v35, %v481_v48  ;;  %v508_v51 = vmul.f32 %v497_v36, %v483_v49  ;;  %v2154_v33 = vld [vmem:[#allocation10 + $0xe0] ss:$12 sps:$4 sm:$0xff]   ;;  %v2160_v39 = vld [vmem:[#allocation10 + $0x8] ss:$12 sps:$4 sm:$0xff]  }
 0x1ce   :  { %v2155_v34 = vld [vmem:[#allocation10 + $0x260] ss:$12 sps:$4 sm:$0xff]   ;;  %v2161_v40 = vld [vmem:[#allocation10 + $0x188] ss:$12 sps:$4 sm:$0xff]  }
 0x1cf   :  { %v532_v12 = vadd.f32 %v518_v42, %v507_v8  ;;  %v534_v52 = vadd.f32 %v526_v43, %v509_v50  ;;  %v531_v22 = vadd.f32 %v514_v44, %v506_v9  ;;  %v533_v53 = vadd.f32 %v522_v45, %v508_v51  ;;  %v2156_v35 = vld [vmem:[#allocation10 + $0x20] ss:$12 sps:$4 sm:$0xff]  }
 0x1d0   :  { %v2157_v36 = vld [vmem:[#allocation10 + $0x1a0] ss:$12 sps:$4 sm:$0xff]  }
 0x1d1   :  { %v536_v54 = vmax.f32 %v532_v12, 0.0  ;;  %v538_v55 = vmax.f32 %v534_v52, 0.0  ;;  %v535_v56 = vmax.f32 %v531_v22, 0.0  ;;  %v537_v5 = vmax.f32 %v533_v53, 0.0  ;;  %v671_v49 = vld [vmem:[%s2590_s6] sm:$0x7] }
 0x1d2   :  { %v680_v8 = vrot.slane %v671_v49, %v2461_v1  ;;  %v676_v50 = vrot.slane %v671_v49, %v2453_v62  ;;  %v684_v22 = vrot.slane %v671_v49, %v2456_v63 }
 0x1d3   :  { %v540_v57 = vpack.c.bf16 %v536_v54, %v536_v54  ;;  %v542_v58 = vpack.c.bf16 %v538_v55, %v538_v55  ;;  %v2515_v59 = vpack.c.bf16 %v535_v56, %v535_v56  ;;  %v2517_v60 = vpack.c.bf16 %v537_v5, %v537_v5 }
 0x1d5   :  { %1232 = vmatprep.mubr.bf16.mxu0 %v540_v57  ;;  %1273 = vmatprep.mubr.bf16.mxu1 %v542_v58 }
 0x1d6   :  { %1233 = vmatmul.mubr.bf16.vlgmr.msra.gmra.mxu0 %v2515_v59  ;;  %1274 = vmatmul.mubr.bf16.vlgmr.msra.gmra.mxu1 %v2517_v60 }
 0x1d7   :  { %1887 = vmatpush3.bf16.msra.mxu0 %v2132_v2  ;;  %1909 = vmatpush3.bf16.msra.mxu1 %v2133_v3 }
 0x1d8   :  { %1314 = vmatprep.mubr.bf16.mxu0 %v540_v57  ;;  %1354 = vmatprep.mubr.bf16.mxu1 %v542_v58 }
 0x1d9   :  { %1888 = vmatprep.subr.bf16.mxu0 %v2134_v4  ;;  %1910 = vmatprep.subr.bf16.mxu1 %v2135_v6 }
 0x1db   :  { %1889 = vmatpush3.bf16.msra.mxu0 %v2136_v7  ;;  %1911 = vmatpush3.bf16.msra.mxu1 %v2137_v10 }
 0x1dc   :  { %1890 = vmatprep.subr.bf16.mxu0 %v2138_v11  ;;  %1912 = vmatprep.subr.bf16.mxu1 %v2139_v15 }
 0x1df   :  { %1891 = vmatpush3.bf16.msra.mxu0 %v2140_v17  ;;  %1913 = vmatpush3.bf16.msra.mxu1 %v2141_v18 }
 0x1e0   :  { %1892 = vmatprep.subr.bf16.mxu0 %v2142_v19  ;;  %1914 = vmatprep.subr.bf16.mxu1 %v2143_v20  ;;  %v2162_v19 = vld [vmem:[#allocation11 + $0x78] sm:$0xff]  }
 0x1e1   :  { %v2163_v20 = vld [vmem:[#allocation11 + $0xb8] sm:$0xff]  }
 0x1e3   :  { %1893 = vmatpush3.bf16.msra.mxu0 %v2144_v21  ;;  %1915 = vmatpush3.bf16.msra.mxu1 %v2145_v24  ;;  %v2164_v21 = vld [vmem:[#allocation11 + $0x38] sm:$0xff]   ;;  %v2165_v24 = vld [vmem:[#allocation11 + $0x70] sm:$0xff]  }
 0x1e4   :  { %1894 = vmatprep.subr.bf16.mxu0 %v2146_v25  ;;  %1916 = vmatprep.subr.bf16.mxu1 %v2147_v26  ;;  %v2166_v25 = vld [vmem:[#allocation11 + $0xb0] sm:$0xff]  }
 0x1e5   :  { %v2167_v26 = vld [vmem:[#allocation11 + $0x30] sm:$0xff]  }
 0x1e7   :  { %1895 = vmatpush3.bf16.msra.mxu0 %v2148_v27  ;;  %1917 = vmatpush3.bf16.msra.mxu1 %v2149_v28  ;;  %v2168_v27 = vld [vmem:[#allocation11 + $0x68] sm:$0xff]  }
 0x1e8   :  { %1896 = vmatprep.subr.bf16.mxu0 %v2150_v29  ;;  %1918 = vmatprep.subr.bf16.mxu1 %v2151_v30  ;;  %v2169_v28 = vld [vmem:[#allocation11 + $0xa8] sm:$0xff]   ;;  %v2171_v30 = vld [vmem:[#allocation11 + $0x60] sm:$0xff]  }
 0x1e9   :  { %v2170_v29 = vld [vmem:[#allocation11 + $0x28] sm:$0xff]  }
 0x1eb   :  { %1897 = vmatpush3.bf16.msra.mxu0 %v2152_v31  ;;  %1919 = vmatpush3.bf16.msra.mxu1 %v2153_v32  ;;  %v2172_v31 = vld [vmem:[#allocation11 + $0xa0] sm:$0xff]  }
 0x1ec   :  { %1898 = vmatprep.subr.bf16.mxu0 %v2154_v33  ;;  %1920 = vmatprep.subr.bf16.mxu1 %v2155_v34  ;;  %v2173_v32 = vld [vmem:[#allocation11 + $0x20] sm:$0xff]   ;;  %v2174_v33 = vld [vmem:[#allocation11 + $0x58] sm:$0xff]  }
 0x1ed   :  { %v2175_v34 = vld [vmem:[#allocation11 + $0x98] sm:$0xff]  }
 0x1ef   :  { %1899 = vmatpush3.bf16.msra.mxu0 %v2156_v35  ;;  %1921 = vmatpush3.bf16.msra.mxu1 %v2157_v36  ;;  %v2176_v35 = vld [vmem:[#allocation11 + $0x18] sm:$0xff]   ;;  %v2177_v36 = vld [vmem:[#allocation11 + $0x50] sm:$0xff]  }
 0x1f0   :  { %1900 = vmatprep.subr.bf16.mxu0 %v2158_v37  ;;  %1922 = vmatprep.subr.bf16.mxu1 %v2159_v38  ;;  %v2178_v37 = vld [vmem:[#allocation11 + $0x90] sm:$0xff]  }
 0x1f1   :  { %v2179_v38 = vld [vmem:[#allocation11 + $0x10] sm:$0xff]  }
 0x1f3   :  { %1901 = vmatpush3.bf16.msra.mxu0 %v2160_v39  ;;  %1923 = vmatpush3.bf16.msra.mxu1 %v2161_v40  ;;  %v2180_v39 = vld [vmem:[#allocation11 + $0x48] sm:$0xff]  }
 0x1f4   :  { %1971 = vmatprep.subr.bf16.mxu1 %v2353_v23  ;;  %1930 = vmatprep.subr.bf16.mxu0 %v2162_v19  ;;  %v2181_v40 = vld [vmem:[#allocation11 + $0x88] sm:$0xff]  }
 0x1f6   :  { %1315 = vmatmul.mubr.bf16.vlgmr.msra.gmra.mxu0 %v2515_v59  ;;  %1355 = vmatmul.mubr.bf16.vlgmr.msra.gmra.mxu1 %v2517_v60 }
 0x1f7   :  { %1987 = vmatprep.mubr.msk.bf16.mxu1 %vm2354_vm2, %v2353_v23  ;;  %1972 = vmatpush3.bf16.msra.mxu1 %v2163_v20 }
 0x1f8   :  { %1931 = vmatpush3.bf16.msra.mxu0 %v2164_v21  ;;  %1973 = vmatprep.subr.bf16.mxu1 %v2353_v23 }
 0x1f9   :  { %1932 = vmatprep.subr.bf16.mxu0 %v2165_v24 }
 0x1fb   :  { %1974 = vmatpush3.bf16.msra.mxu1 %v2166_v25 }
 0x1fc   :  { %1933 = vmatpush3.bf16.msra.mxu0 %v2167_v26  ;;  %1975 = vmatprep.subr.bf16.mxu1 %v2353_v23 }
 0x1fd   :  { %1934 = vmatprep.subr.bf16.mxu0 %v2168_v27 }
 0x1ff   :  { %1976 = vmatpush3.bf16.msra.mxu1 %v2169_v28 }
 0x200   :  { %1935 = vmatpush3.bf16.msra.mxu0 %v2170_v29  ;;  %1977 = vmatprep.subr.bf16.mxu1 %v2353_v23 }
 0x201   :  { %1936 = vmatprep.subr.bf16.mxu0 %v2171_v30 }
 0x203   :  { %1978 = vmatpush3.bf16.msra.mxu1 %v2172_v31 }
 0x204   :  { %1937 = vmatpush3.bf16.msra.mxu0 %v2173_v32  ;;  %1979 = vmatprep.subr.bf16.mxu1 %v2353_v23 }
 0x205   :  { %1938 = vmatprep.subr.bf16.mxu0 %v2174_v33 }
 0x207   :  { %1980 = vmatpush3.bf16.msra.mxu1 %v2175_v34 }
 0x208   :  { %1939 = vmatpush3.bf16.msra.mxu0 %v2176_v35  ;;  %1981 = vmatprep.subr.bf16.mxu1 %v2353_v23 }
 0x209   :  { %1940 = vmatprep.subr.bf16.mxu0 %v2177_v36 }
 0x20b   :  { %1982 = vmatpush3.bf16.msra.mxu1 %v2178_v37 }
 0x20c   :  { %1941 = vmatpush3.bf16.msra.mxu0 %v2179_v38  ;;  %1983 = vmatprep.subr.bf16.mxu1 %v2353_v23 }
 0x20d   :  { %1942 = vmatprep.subr.bf16.mxu0 %v2180_v39 }
 0x20f   :  { %1984 = vmatpush3.bf16.msra.mxu1 %v2181_v40 }
 0x210   :  { %1985 = vmatprep.subr.bf16.mxu1 %v2353_v23  ;;  %v162_v23 = vsub.s32 5, %v2450_v61 }
 0x296   :  { %v1234_v41 = vpop.f32.mrf.mxu0  ;;  %v1275_v42 = vpop.f32.mrf.mxu1 }
 0x297   :  { %v1235_v52 = vadd.f32 %v1234_v41, %v676_v50  ;;  %v2182_v41 = vld [vmem:[#allocation11 + $0x8] sm:$0xff]  }
 0x298   :  { %v1236_v43 = vpop.f32.mrf.mxu0  ;;  %v1277_v44 = vpop.f32.mrf.mxu1  ;;  %1943 = vmatpush3.bf16.msra.mxu0 %v2182_v41 }
 0x299   :  { %v1237_v9 = vadd.f32 %v1236_v43, %v680_v8  ;;  %v2534_v58 = vadd.f32 %v1275_v42, %v1235_v52  ;;  %v2183_v42 = vld [vmem:[#allocation11 + $0x40] sm:$0xff]   ;;  %v166_v52 = vsub.s32 6, %v2450_v61 }
 0x29a   :  { %v1238_v45 = vpop.f32.mrf.mxu0  ;;  %v1279_v46 = vpop.f32.mrf.mxu1  ;;  %v2184_v43 = vld [vmem:[#allocation11 + $0x80] sm:$0xff]   ;;  %1944 = vmatprep.subr.bf16.mxu0 %v2183_v42 }
 0x29b   :  { %v2532_v55 = vadd.f32 %v1277_v44, %v1237_v9  ;;  %v1368_v10 = vmul.f32 %v2534_v58, %v2534_v58  ;;  %v2185_v44 = vld [vmem:[#allocation11] sm:$0xff]   ;;  %1986 = vmatpush3.bf16.msra.mxu1 %v2184_v43 }
 0x29c   :  { %v1239_v47 = vpop.f32.mrf.mxu0  ;;  %v1280_v48 = vpop.f32.mrf.mxu1  ;;  %1945 = vmatpush3.bf16.msra.mxu0 %v2185_v44 }
 0x29d   :  { %v1369_v4 = vmul.f32 %v2532_v55, %v2532_v55  ;;  %v1364_v7 = vadd.f32 %v2532_v55, %v2534_v58 }
 0x29f   :  { %v1371_v17 = vadd.f32 %v1369_v4, %v1368_v10 }
 0x2b6   :  { %v1902_v51 = vpop.f32.mrf.mxu0  ;;  %v1924_v12 = vpop.f32.mrf.mxu1 }
 0x2b8   :  { %v1903_v53 = vpop.f32.mrf.mxu0  ;;  %v1925_v54 = vpop.f32.mrf.mxu1 }
 0x2b9   :  { %v1904_v56 = vadd.f32 %v1903_v53, %v1902_v51  ;;  %v1926_v60 = vadd.f32 %v1925_v54, %v1924_v12  ;;  %v158_v51 = vsub.s32 4, %v2450_v61  ;;  %v1362_v12 = vld [vmem:[%s2591_s7] sm:$0x7]  ;;  %v163_v61 = vrot.slane %v2458_v0, %v162_v23 }
 0x2ba   :  { %v1905_v5 = vpop.f32.mrf.mxu0  ;;  %v1927_v57 = vpop.f32.mrf.mxu1  ;;  %v1396_v54 = vrot.slane %v1362_v12, %v2461_v1 }
 0x2bb   :  { %v1317_v59 = vadd.f32 %v1904_v56, %v684_v22  ;;  %v1363_v22 = vld [vmem:[%s2592_s8] sm:$0x7]  ;;  %v159_v53 = vrot.slane %v2458_v0, %v158_v51  ;;  %v1400_v56 = vrot.slane %v1362_v12, %v2456_v63  ;;  %v410_v20 = vadd.f32 %v2498_v16, %v163_v61 }
 0x2bc   :  { %v1906_v2 = vpop.f32.mrf.mxu0  ;;  %v1928_v3 = vpop.f32.mrf.mxu1  ;;  %v1415_v4 = vrot.slane %v1363_v22, %v2461_v1  ;;  %v1857_v16 = vld [vmem:[%s2594_s10] ss:$0 sm:$0xff] }
 0x2bd   :  { %v2538_v6 = vadd.f32 %v1926_v60, %v1317_v59  ;;  %v1392_v60 = vrot.slane %v1362_v12, %v2453_v62  ;;  %v167_v3 = vrot.slane %v2458_v0, %v166_v52 }
 0x2bf   :  { %v1365_v11 = vadd.f32 %v1364_v7, %v2538_v6  ;;  %v1370_v15 = vmul.f32 %v2538_v6, %v2538_v6  ;;  %v1419_v7 = vrot.slane %v1363_v22, %v2456_v63  ;;  %v449_v19 = vadd.f32 %v2494_v13, %v167_v3 }
 0x2c1   :  { %1366 = vadd.xlane.f32.xlu1 %v1365_v11  ;;  %v1372_v18 = vadd.f32 %v1371_v17, %v1370_v15 }
 0x2c5   :  { %1373 = vadd.xlane.f32.xlu1 %v1372_v18 }
 0x34a   :  { %v1367_v45 = vpop.xlane.xlu1 %1366 }
 0x34b   :  { %v1375_v46 = vmul.f32 0.0033333334, %v1367_v45 }
 0x34d   :  { %v1377_v48 = vmul.f32 %v1375_v46, %v1375_v46  ;;  %v1380_v5 = vsub.f32 %v2534_v58, %v1375_v46  ;;  %v1381_v57 = vsub.f32 %v2532_v55, %v1375_v46  ;;  %v1382_v59 = vsub.f32 %v2538_v6, %v1375_v46 }
 0x34e   :  { %v1374_v47 = vpop.xlane.xlu1 %1373  ;;  %v1411_v58 = vrot.slane %v1363_v22, %v2453_v62  ;;  %v408_v6 = vadd.f32 %v2496_v14, %v159_v53 }
 0x34f   :  { %v1376_v49 = vmul.f32 0.0033333334, %v1374_v47 }
 0x351   :  { %v1378_v8 = vsub.f32 %v1376_v49, %v1377_v48 }
 0x353   :  { %v1379_v50 = vmax.f32 %v1378_v8, 0.0 }
 0x355   :  { %v1383_v9 = vadd.f32 1e-05, %v1379_v50 }
 0x357   :  { %2188 = vrsqrt.f32 %v1383_v9 }
 0x364   :  { %v2189_v2 = vpop.eup %2188 }
 0x365   :  { %v1386_v10 = vmul.f32 %v2189_v2, %v1381_v57  ;;  %v1387_v11 = vmul.f32 %v2189_v2, %v1382_v59  ;;  %v1385_v15 = vmul.f32 %v2189_v2, %v1380_v5 }
 0x367   :  { %v1405_v17 = vmul.f32 %v1396_v54, %v1386_v10  ;;  %v1406_v55 = vmul.f32 %v1400_v56, %v1387_v11  ;;  %v1404_v18 = vmul.f32 %v1392_v60, %v1385_v15 }
 0x369   :  { %v1424_v21 = vadd.f32 %v1415_v4, %v1405_v17  ;;  %v1425_v0 = vadd.f32 %v1419_v7, %v1406_v55  ;;  %v1423_v24 = vadd.f32 %v1411_v58, %v1404_v18 }
 0x36b   :  { %v1427_v1 = vadd.f32 %v1424_v21, %v410_v20  ;;  %v1428_v25 = vadd.f32 %v1425_v0, %v449_v19  ;;  %v1426_v63 = vadd.f32 %v1423_v24, %v408_v6 }
 0x36d   :  { %v1430_v26 = vmax.f32 %v1427_v1, 0.0  ;;  %v1431_v27 = vmax.f32 %v1428_v25, 0.0  ;;  %v1429_v28 = vmax.f32 %v1426_v63, 0.0 }
 0x36f   :  { %v1433_v29 = vpack.c.bf16 %v1430_v26, %v1430_v26  ;;  %v1434_v62 = vpack.c.bf16 %v1431_v27, %v1431_v27  ;;  %v1432_v30 = vpack.c.bf16 %v1429_v28, %v1429_v28 }
 0x371   :  { %1666 = vmatprep.mubr.bf16.mxu0 %v1433_v29  ;;  %1988 = vmatmul.mubr.bf16.vlgmr.msra.gmra.mxu1 %v1434_v62 }
 0x372   :  { %1667 = vmatmul.mubr.bf16.vlgmr.msra.gmra.mxu0 %v1432_v30 }
 0x431   :  { %v1708_v14 = vpop.f32.mrf.mxu1 }
 0x432   :  { %v1946_v31 = vpop.f32.mrf.mxu0 }
 0x433   :  { %v1989_v13 = vpop.f32.mrf.mxu1 }
 0x434   :  { %v1947_v32 = vpop.f32.mrf.mxu0 }
 0x435   :  { %v1948_v33 = vadd.f32 %v1947_v32, %v1946_v31  ;;  %v1711_v34 = vpop.f32.mrf.mxu1 }
 0x436   :  { %v1949_v35 = vpop.f32.mrf.mxu0 }
 0x437   :  { %v1669_v36 = vadd.f32 %v1948_v33, %v1857_v16  ;;  %v1990_v37 = vpop.f32.mrf.mxu1 }
 0x438   :  { %v1950_v38 = vpop.f32.mrf.mxu0 }
 0x439   :  { %v1709_v39 = vadd.f32 %v1708_v14, %v1669_v36 }
 0x43b   :  { %1714 = vst [vmem:[#allocation13] sm:$0xff] %v1709_v39 }
 0x43c   :  { %2321 = shalt.err (!%p2318_p6)
}
 0x43d   :  { %1724 = dma.vmem_to_hbm [thread:$0]  %s1722_s16, 128, %s2595_s11, [#allocation4]  }
 0x43e   :  { %2338 = dma.done.wait [#allocation4], 128  }
 0x43f   :  { %2339 = vsyncadd [#allocation4], 4294967168 }
 0x440   :  { %1728 = vsyncpa [#allocation3], 1 }
 0x441   :  { %1729 = vsyncpa [#allocation6], 1 }
 0x442   :  { %1730 = vsyncpa [#allocation9], 1 }
 0x443   :  { %1731 = vsyncpa [#allocation12], 1 }
 0x444   :  { %1732 = vsyncpa [#allocation4], 1 }

// kernel: tpu_custom_call.1
= control target key start
LH: loop header
LB: loop body
LE: loop exit
PB: predicated region body
PF: predicated region fallthrough
CT: control target
= control target key end

     0   :  { %16 = vsyncpa [#allocation3], 0  ;;  %s2584_s0 = inlined_call_operand.hbm [shape: f32[8,40], index: 0, kind: input, shape index: {}]   ;;  %s2585_s1 = inlined_call_operand.hbm [shape: bf16[40,896], index: 1, kind: input, shape index: {}]   ;;  %s2586_s2 = inlined_call_operand.hbm [shape: f32[1,896], index: 2, kind: input, shape index: {}]   ;;  %s2587_s3 = inlined_call_operand.vmem [shape: f32[1,512], index: 3, kind: input, shape index: {}]   ;;  %s2588_s4 = inlined_call_operand.hbm [shape: f32[1,512], index: 4, kind: input, shape index: {}]   ;;  %s2589_s5 = inlined_call_operand.hbm [shape: bf16[512,384], index: 5, kind: input, shape index: {}]   ;;  %s2590_s6 = inlined_call_operand.vmem [shape: f32[1,384], index: 6, kind: input, shape index: {}]   ;;  %s2591_s7 = inlined_call_operand.vmem [shape: f32[1,384], index: 7, kind: input, shape index: {}]   ;;  %s2592_s8 = inlined_call_operand.vmem [shape: f32[1,384], index: 8, kind: input, shape index: {}]   ;;  %s2593_s9 = inlined_call_operand.hbm [shape: bf16[384,128], index: 9, kind: input, shape index: {}]   ;;  %s2594_s10 = inlined_call_operand.vmem [shape: f32[1,128], index: 10, kind: input, shape index: {}]   ;;  %s2595_s11 = inlined_call_operand.hbm [shape: f32[8,128], index: 11, kind: output, shape index: {}]  }
   0x1   :  { %17 = vsyncpa [#allocation6], 0 }
   0x2   :  { %18 = vsyncpa [#allocation9], 0 }
   0x3   :  { %19 = vsyncpa [#allocation12], 0 }
   0x4   :  { %20 = vsyncpa [#allocation4], 0  ;;  %s2340_s17 = smov [#allocation5]  }
   0x5   :  { %s36_s18 = sshll.u32 %s2340_s17, 4  ;;  %s37_s18 = int_to_ptr.vmem [resolvable:$true] %s36_s18 }
   0x6   :  { %s2198_s19 = scalar_lea.vmem %s37_s18, 2240  ;;  %p2203_p1 = scmp.lt.s32.totalorder %s37_s18, %s37_s18 }
   0x7   :  { %p2199_p0 = scmp.ne.s32.totalorder %s37_s18, %s2198_s19  ;;  %p2204_p2 = scmp.lt.s32.totalorder %s2198_s19, %s2198_s19 }
   0x9   :  { %p2205_p3 = por %p2204_p2, %p2203_p1 }
   0xb   :  { %p2206_p4 = pnand %p2205_p3, %p2199_p0 }
   0xd   :  { %2209 = shalt.err (!%p2206_p4)
}
   0xe   :  { %s2341_s20 = smov 448   ;;  %s2342_s21 = smov 28  }
   0xf   :  { %42 = dma.hbm_to_vmem [thread:$0]  %s2585_s1, 2240, %s37_s18, [#allocation6], %s2341_s20, %s2341_s20, %s2342_s21  }
  0x10   :  { %s2343_s24 = smov [#allocation8]   ;;  %s2344_s26 = smov [#allocation2]  }
  0x11   :  { %s61_s25 = sshll.u32 %s2343_s24, 4  ;;  %s27_s27 = sshll.u32 %s2344_s26, 4  ;;  %s62_s25 = int_to_ptr.vmem [resolvable:$true] %s61_s25  ;;  %s28_s27 = int_to_ptr.vmem [resolvable:$true] %s27_s27 }
  0x12   :  { %s2218_s28 = scalar_lea.vmem %s62_s25, 64  ;;  %p2223_p6 = scmp.lt.s32.totalorder %s62_s25, %s62_s25 }
  0x13   :  { %p2219_p5 = scmp.ne.s32.totalorder %s62_s25, %s2218_s28  ;;  %p2224_p7 = scmp.lt.s32.totalorder %s2218_s28, %s2218_s28 }
  0x15   :  { %p2225_p8 = por %p2224_p7, %p2223_p6 }
  0x17   :  { %p2226_p9 = pnand %p2225_p8, %p2219_p5 }
  0x19   :  { %2229 = shalt.err (!%p2226_p9)
}
  0x1a   :  { %64 = dma.hbm_to_vmem [thread:$0]  %s2588_s4, 64, %s62_s25, [#allocation9]  }
  0x1b   :  { %s2238_s12 = scalar_lea.vmem %s28_s27, 128  ;;  %p2243_p11 = scmp.lt.s32.totalorder %s28_s27, %s28_s27 }
  0x1c   :  { %p2239_p10 = scmp.ne.s32.totalorder %s28_s27, %s2238_s12  ;;  %p2244_p12 = scmp.lt.s32.totalorder %s2238_s12, %s2238_s12 }
  0x1e   :  { %p2245_p13 = por %p2244_p12, %p2243_p11 }
  0x20   :  { %p2246_p0 = pnand %p2245_p13, %p2239_p10 }
  0x22   :  { %2249 = shalt.err (!%p2246_p0)
}
  0x23   :  { %30 = dma.hbm_to_vmem [thread:$0]  %s2584_s0, 128, %s28_s27, [#allocation3]  }
  0x24   :  { %s2345_s14 = smov [#allocation7]   ;;  %s2346_s16 = smov [#allocation10]  }
  0x25   :  { %s49_s15 = sshll.u32 %s2345_s14, 4  ;;  %s70_s17 = sshll.u32 %s2346_s16, 4  ;;  %s50_s15 = int_to_ptr.vmem [resolvable:$true] %s49_s15  ;;  %s71_s17 = int_to_ptr.vmem [resolvable:$true] %s70_s17 }
  0x26   :  { %s2258_s18 = scalar_lea.vmem %s50_s15, 112  ;;  %s2262_s4 = scalar_lea.vmem %s50_s15, 128 }
  0x27   :  { %p2259_p1 = scmp.ne.s32.totalorder %s50_s15, %s2258_s18  ;;  %p2263_p2 = scmp.lt.s32.totalorder %s50_s15, %s50_s15 }
  0x28   :  { %p2264_p3 = scmp.lt.s32.totalorder %s2262_s4, %s2258_s18 }
  0x2a   :  { %p2265_p4 = por %p2264_p3, %p2263_p2 }
  0x2c   :  { %p2266_p5 = pnand %p2265_p4, %p2259_p1 }
  0x2e   :  { %2269 = shalt.err (!%p2266_p5)
}
  0x2f   :  { %52 = dma.hbm_to_vmem [thread:$0]  %s2586_s2, 112, %s50_s15, [#allocation6]  }
  0x30   :  { %s2278_s21 = scalar_lea.vmem %s71_s17, 12288  ;;  %p2283_p7 = scmp.lt.s32.totalorder %s71_s17, %s71_s17 }
  0x31   :  { %p2279_p6 = scmp.ne.s32.totalorder %s71_s17, %s2278_s21  ;;  %p2284_p8 = scmp.lt.s32.totalorder %s2278_s21, %s2278_s21 }
  0x33   :  { %p2285_p9 = por %p2284_p8, %p2283_p7 }
  0x35   :  { %p2286_p10 = pnand %p2285_p9, %p2279_p6 }
  0x37   :  { %2289 = shalt.err (!%p2286_p10)
}
  0x38   :  { %s2347_s0 = smov 192   ;;  %s2348_s22 = smov 12  }
  0x39   :  { %76 = dma.hbm_to_vmem [thread:$0]  %s2589_s5, 12288, %s71_s17, [#allocation9], %s2347_s0, %s2347_s0, %s2348_s22  }
  0x3a   :  { %s2349_s25 = smov [#allocation11]  }
  0x3b   :  { %s88_s26 = sshll.u32 %s2349_s25, 4  ;;  %s89_s26 = int_to_ptr.vmem [resolvable:$true] %s88_s26 }
  0x3c   :  { %s2298_s27 = scalar_lea.vmem %s89_s26, 3072  ;;  %p2303_p12 = scmp.lt.s32.totalorder %s89_s26, %s89_s26 }
  0x3d   :  { %p2299_p11 = scmp.ne.s32.totalorder %s89_s26, %s2298_s27  ;;  %p2304_p13 = scmp.lt.s32.totalorder %s2298_s27, %s2298_s27 }
  0x3f   :  { %p2305_p0 = por %p2304_p13, %p2303_p12 }
  0x41   :  { %p2306_p1 = pnand %p2305_p0, %p2299_p11 }
  0x43   :  { %2309 = shalt.err (!%p2306_p1)
}
  0x44   :  { %s2350_s2 = smov 64   ;;  %s2351_s28 = smov 4  }
  0x45   :  { %94 = dma.hbm_to_vmem [thread:$0]  %s2593_s9, 3072, %s89_s26, [#allocation12], %s2350_s2, %s2350_s2, %s2351_s28  }
  0x46   :  { %2330 = dma.done.wait [#allocation3], 128  }
  0x47   :  { %2331 = vsyncadd [#allocation3], 4294967168 }
  0x48   :  { %2332 = dma.done.wait [#allocation6], 2352  }
  0x49   :  { %2333 = vsyncadd [#allocation6], 4294964944 }
  0x4a   :  { %2334 = dma.done.wait [#allocation9], 12352  }
  0x4b   :  { %2335 = vsyncadd [#allocation9], 4294954944 }
  0x4c   :  { %2336 = dma.done.wait [#allocation12], 3072  }
  0x4d   :  { %2337 = vsyncadd [#allocation12], 4294964224  ;;  %v2352_v0 = vmov 0   ;;  %v134_v1 = vld [vmem:[#allocation5 + $0x70] sm:$0xff]  ;;  %vm269_vm0 = vcmask 1043456   ;;  %v135_v2 = vld [vmem:[#allocation5 + $0x78] sm:$0xff]  ;;  %v140_v60 = vlaneseq }
  0x4e   :  { %323 = vmatprep.mubr.bf16.mxu0 %v2352_v0  ;;  %364 = vmatprep.mubr.bf16.mxu1 %v2352_v0  ;;  %v1748_v3 = vcombine.high %v134_v1, %v134_v1  ;;  %v1750_v4 = vcombine.high %v135_v2, %v135_v2  ;;  %v1747_v5 = vcombine.low %v134_v1, %v134_v1  ;;  %v2011_v7 = vld [vmem:[#allocation5 + $0x3c] ss:$28 sps:$4 sm:$0xff]   ;;  %v2013_v8 = vld [vmem:[#allocation5 + $0x44] ss:$28 sps:$4 sm:$0xff]   ;;  %v2019_v14 = vld [vmem:[#allocation5 + $0xc] ss:$28 sps:$4 sm:$0xff]  }
  0x4f   :  { %v1749_v6 = vcombine.low %v135_v2, %v135_v2  ;;  %v2015_v11 = vld [vmem:[#allocation5 + $0x38] ss:$28 sps:$4 sm:$0xff]   ;;  %v2016_v12 = vld [vmem:[#allocation5 + $0x40] ss:$28 sps:$4 sm:$0xff]   ;;  %v2022_v16 = vld [vmem:[#allocation5 + $0x8] ss:$28 sps:$4 sm:$0xff]  }
  0x50   :  { %1754 = vmatprep.subr.msk.bf16.mxu0 %vm269_vm0, %v1748_v3  ;;  %1756 = vmatprep.subr.msk.bf16.mxu1 %vm269_vm0, %v1750_v4  ;;  %v271_v9 = vsel %vm269_vm0, %v1747_v5, 0  ;;  %v2017_v13 = vld [vmem:[#allocation5 + $0x4] ss:$28 sps:$4 sm:$0xff]   ;;  %v116_v17 = vld [vmem:[#allocation2] sm:$0xff]  ;;  %vm265_vm1 = vcmask 326656   ;;  %v2353_v23 = vmov 0.0  }
  0x51   :  { %v277_v10 = vsel %vm269_vm0, %v1749_v6, 0  ;;  %302 = vmatpush1.bf16.msra.mxu0 %v271_v9  ;;  %v2021_v15 = vld [vmem:[#allocation5] ss:$28 sps:$4 sm:$0xff]   ;;  %v117_v18 = vpack.c.bf16 %v116_v17, %v116_v17  ;;  %v2025_v20 = vld [vmem:[#allocation5 + $0x88] ss:$0 sps:$4 sm:$0xff]   ;;  %vm2354_vm2 = vmmov 0  }
  0x52   :  { %343 = vmatpush1.bf16.msra.mxu1 %v277_v10  ;;  %303 = vmatprep.subr.bf16.mxu0 %v2011_v7  ;;  %v136_v19 = vld [vmem:[#allocation5 + $0x80] sm:$0xff]  ;;  %v2028_v24 = vld [vmem:[#allocation5 + $0x4c] ss:$28 sps:$4 sm:$0xff]   ;;  %v289_v25 = vsel %vm269_vm0, %v2025_v20, 0  ;;  %v2032_v29 = vld [vmem:[#allocation5 + $0x14] ss:$28 sps:$4 sm:$0xff]  }
  0x53   :  { %344 = vmatprep.subr.bf16.mxu1 %v2013_v8  ;;  %v1752_v21 = vcombine.high %v136_v19, %v136_v19  ;;  %v1751_v22 = vcombine.low %v136_v19, %v136_v19  ;;  %v2029_v27 = vld [vmem:[#allocation5 + $0x50] ss:$28 sps:$4 sm:$0xff]   ;;  %v2026_v28 = vld [vmem:[#allocation5 + $0x48] ss:$28 sps:$4 sm:$0xff]   ;;  %v2033_v30 = vld [vmem:[#allocation5 + $0x18] ss:$28 sps:$4 sm:$0xff]  }
  0x54   :  { %v2030_v31 = vld [vmem:[#allocation5 + $0x10] ss:$28 sps:$4 sm:$0xff]   ;;  %v2043_v38 = vld [vmem:[#allocation10 + $0x210] ss:$12 sps:$4 sm:$0xff]   ;;  %v2055_v46 = vld [vmem:[#allocation10 + $0x1e0] ss:$12 sps:$4 sm:$0xff]  }
  0x55   :  { %304 = vmatpush1.bf16.msra.mxu0 %v2015_v11  ;;  %v283_v26 = vsel %vm269_vm0, %v1751_v22, 0  ;;  %v2039_v32 = vld [vmem:[#allocation10 + $0x22c] ss:$12 sps:$4 sm:$0xff]   ;;  %v2037_v34 = vld [vmem:[#allocation10 + $0x228] ss:$12 sps:$4 sm:$0xff]   ;;  %v2450_v61 = vshrl.u32 %v140_v60, 7 }
  0x56   :  { %345 = vmatpush1.bf16.msra.mxu1 %v2016_v12  ;;  %305 = vmatprep.subr.bf16.mxu0 %v2017_v13  ;;  %v2036_v33 = vld [vmem:[#allocation10 + $0xac] ss:$12 sps:$4 sm:$0xff]   ;;  %v2034_v35 = vld [vmem:[#allocation10 + $0xa8] ss:$12 sps:$4 sm:$0xff]   ;;  %v2040_v39 = vld [vmem:[#allocation10 + $0x90] ss:$12 sps:$4 sm:$0xff]  }
  0x57   :  { %346 = vmatprep.subr.bf16.mxu1 %v2019_v14  ;;  %v2045_v36 = vld [vmem:[#allocation10 + $0x214] ss:$12 sps:$4 sm:$0xff]   ;;  %v2051_v40 = vld [vmem:[#allocation10 + $0x1fc] ss:$12 sps:$4 sm:$0xff]   ;;  %v2049_v42 = vld [vmem:[#allocation10 + $0x1f8] ss:$12 sps:$4 sm:$0xff]  }
  0x58   :  { %v2042_v37 = vld [vmem:[#allocation10 + $0x94] ss:$12 sps:$4 sm:$0xff]   ;;  %v2048_v41 = vld [vmem:[#allocation10 + $0x7c] ss:$12 sps:$4 sm:$0xff]   ;;  %v2046_v43 = vld [vmem:[#allocation10 + $0x78] ss:$12 sps:$4 sm:$0xff]  }
  0x59   :  { %306 = vmatpush1.bf16.msra.mxu0 %v2021_v15  ;;  %v2057_v44 = vld [vmem:[#allocation10 + $0x1e4] ss:$12 sps:$4 sm:$0xff]   ;;  %v2052_v47 = vld [vmem:[#allocation10 + $0x60] ss:$12 sps:$4 sm:$0xff]   ;;  %v2061_v50 = vld [vmem:[#allocation10 + $0x1c8] ss:$12 sps:$4 sm:$0xff]  }
  0x5a   :  { %347 = vmatpush1.bf16.msra.mxu1 %v2022_v16  ;;  %1758 = vmatprep.subr.msk.bf16.mxu0 %vm269_vm0, %v1752_v21  ;;  %v2054_v45 = vld [vmem:[#allocation10 + $0x64] ss:$12 sps:$4 sm:$0xff]   ;;  %v2063_v48 = vld [vmem:[#allocation10 + $0x1cc] ss:$12 sps:$4 sm:$0xff]   ;;  %v2058_v51 = vld [vmem:[#allocation10 + $0x48] ss:$12 sps:$4 sm:$0xff]  }
  0x5b   :  { %1961 = vmatprep.subr.bf16.mxu1 %v2353_v23  ;;  %v2060_v49 = vld [vmem:[#allocation10 + $0x4c] ss:$12 sps:$4 sm:$0xff]   ;;  %v2069_v52 = vld [vmem:[#allocation10 + $0x1b4] ss:$12 sps:$4 sm:$0xff]   ;;  %v2067_v54 = vld [vmem:[#allocation10 + $0x1b0] ss:$12 sps:$4 sm:$0xff]  }
  0x5c   :  { %1755 = vmatmul.mubr.msk.bf16.vlgmr.msra.gmra.mxu0 %vm265_vm1, %v117_v18  ;;  %v2066_v53 = vld [vmem:[#allocation10 + $0x34] ss:$12 sps:$4 sm:$0xff]   ;;  %v2064_v55 = vld [vmem:[#allocation10 + $0x30] ss:$12 sps:$4 sm:$0xff]   ;;  %v2073_v58 = vld [vmem:[#allocation10 + $0x198] ss:$12 sps:$4 sm:$0xff]  }
  0x5d   :  { %1757 = vmatmul.mubr.msk.bf16.vlgmr.msra.gmra.mxu1 %vm265_vm1, %v117_v18  ;;  %405 = vmatprep.mubr.bf16.mxu0 %v2352_v0  ;;  %v2075_v56 = vld [vmem:[#allocation10 + $0x19c] ss:$12 sps:$4 sm:$0xff]   ;;  %v2070_v59 = vld [vmem:[#allocation10 + $0x18] ss:$12 sps:$4 sm:$0xff]   ;;  %v2453_v62 = vsub.s32 0, %v2450_v61  ;;  %v2456_v63 = vsub.s32 2, %v2450_v61 }
  0x5e   :  { %1962 = vmatpush3.bf16.msra.mxu1 %v289_v25  ;;  %384 = vmatpush1.bf16.msra.mxu0 %v283_v26  ;;  %v2072_v57 = vld [vmem:[#allocation10 + $0x1c] ss:$12 sps:$4 sm:$0xff]   ;;  %v2458_v0 = vld [vmem:[#allocation7] sm:$0xff]  ;;  %v2461_v1 = vsub.s32 1, %v2450_v61  ;;  %v2470_v5 = vsub.s32 3, %v2450_v61  ;;  %s2355_s15 = smov [#allocation13]  }
  0x5f   :  { %1963 = vmatprep.subr.bf16.mxu1 %v2353_v23  ;;  %385 = vmatprep.subr.bf16.mxu0 %v2028_v24  ;;  %v143_v2 = vrot.slane %v2458_v0, %v2453_v62  ;;  %v151_v3 = vrot.slane %v2458_v0, %v2456_v63  ;;  %v2118_v60 = vld [vmem:[#allocation10 + $0xd8] ss:$12 sps:$4 sm:$0xff]   ;;  %s1721_s16 = sshll.u32 %s2355_s15, 4  ;;  %s1722_s16 = int_to_ptr.vmem [resolvable:$true] %s1721_s16 }
  0x60   :  { %1967 = vmatprep.mubr.msk.bf16.mxu1 %vm2354_vm2, %v2353_v23  ;;  %v147_v4 = vrot.slane %v2458_v0, %v2461_v1  ;;  %v155_v13 = vrot.slane %v2458_v0, %v2470_v5  ;;  %s2310_s17 = scalar_lea.vmem %s1722_s16, 128  ;;  %p2315_p3 = scmp.lt.s32.totalorder %s1722_s16, %s1722_s16 }
  0x61   :  { %p2311_p2 = scmp.ne.s32.totalorder %s1722_s16, %s2310_s17  ;;  %p2316_p4 = scmp.lt.s32.totalorder %s2310_s17, %s2310_s17 }
  0x62   :  { %1964 = vmatpush3.bf16.msra.mxu1 %v2029_v27  ;;  %386 = vmatpush1.bf16.msra.mxu0 %v2026_v28 }
  0x63   :  { %1965 = vmatprep.subr.bf16.mxu1 %v2353_v23  ;;  %387 = vmatprep.subr.bf16.mxu0 %v2032_v29  ;;  %p2317_p5 = por %p2316_p4, %p2315_p3 }
  0x65   :  { %p2318_p6 = pnand %p2317_p5, %p2311_p2 }
  0x66   :  { %1966 = vmatpush3.bf16.msra.mxu1 %v2033_v30  ;;  %388 = vmatpush1.bf16.msra.mxu0 %v2030_v31  ;;  %v2078_v30 = vld [vmem:[#allocation10 + $0x4] ss:$12 sps:$4 sm:$0xff]  }
  0x67   :  { %1241 = vmatprep.subr.bf16.mxu1 %v2039_v32  ;;  %1200 = vmatprep.subr.bf16.mxu0 %v2036_v33  ;;  %v2081_v31 = vld [vmem:[#allocation10 + $0x184] ss:$12 sps:$4 sm:$0xff]   ;;  %v2076_v32 = vld [vmem:[#allocation10] ss:$12 sps:$4 sm:$0xff]  }
  0x68   :  { %v2079_v33 = vld [vmem:[#allocation10 + $0x180] ss:$12 sps:$4 sm:$0xff]  }
  0x69   :  { %1968 = vmatmul.mubr.msk.bf16.vlgmr.msra.gmra.mxu1 %vm265_vm1, %v117_v18  ;;  %1759 = vmatmul.mubr.msk.bf16.vlgmr.msra.gmra.mxu0 %vm265_vm1, %v117_v18 }
  0x6a   :  { %1242 = vmatpush1.bf16.msra.mxu1 %v2037_v34  ;;  %1201 = vmatpush1.bf16.msra.mxu0 %v2034_v35  ;;  %v2084_v34 = vld [vmem:[#allocation10 + $0x16c] ss:$12 sps:$4 sm:$0xff]  }
  0x6b   :  { %1243 = vmatprep.subr.bf16.mxu1 %v2045_v36  ;;  %1202 = vmatprep.subr.bf16.mxu0 %v2042_v37  ;;  %v2087_v35 = vld [vmem:[#allocation10 + $0x2ec] ss:$12 sps:$4 sm:$0xff]   ;;  %v2082_v36 = vld [vmem:[#allocation10 + $0x168] ss:$12 sps:$4 sm:$0xff]  }
  0x6c   :  { %v2085_v37 = vld [vmem:[#allocation10 + $0x2e8] ss:$12 sps:$4 sm:$0xff]  }
  0x6e   :  { %1244 = vmatpush1.bf16.msra.mxu1 %v2043_v38  ;;  %1203 = vmatpush1.bf16.msra.mxu0 %v2040_v39  ;;  %v2090_v38 = vld [vmem:[#allocation10 + $0x154] ss:$12 sps:$4 sm:$0xff]  }
  0x6f   :  { %1245 = vmatprep.subr.bf16.mxu1 %v2051_v40  ;;  %1204 = vmatprep.subr.bf16.mxu0 %v2048_v41  ;;  %v2093_v39 = vld [vmem:[#allocation10 + $0x2d4] ss:$12 sps:$4 sm:$0xff]   ;;  %v2088_v40 = vld [vmem:[#allocation10 + $0x150] ss:$12 sps:$4 sm:$0xff]  }
  0x70   :  { %v2091_v41 = vld [vmem:[#allocation10 + $0x2d0] ss:$12 sps:$4 sm:$0xff]  }
  0x72   :  { %1246 = vmatpush1.bf16.msra.mxu1 %v2049_v42  ;;  %1205 = vmatpush1.bf16.msra.mxu0 %v2046_v43  ;;  %v2096_v42 = vld [vmem:[#allocation10 + $0x13c] ss:$12 sps:$4 sm:$0xff]  }
  0x73   :  { %1247 = vmatprep.subr.bf16.mxu1 %v2057_v44  ;;  %1206 = vmatprep.subr.bf16.mxu0 %v2054_v45  ;;  %v2099_v43 = vld [vmem:[#allocation10 + $0x2bc] ss:$12 sps:$4 sm:$0xff]   ;;  %v2094_v44 = vld [vmem:[#allocation10 + $0x138] ss:$12 sps:$4 sm:$0xff]  }
  0x74   :  { %v2097_v45 = vld [vmem:[#allocation10 + $0x2b8] ss:$12 sps:$4 sm:$0xff]  }
  0x76   :  { %1248 = vmatpush1.bf16.msra.mxu1 %v2055_v46  ;;  %1207 = vmatpush1.bf16.msra.mxu0 %v2052_v47  ;;  %v2102_v46 = vld [vmem:[#allocation10 + $0x124] ss:$12 sps:$4 sm:$0xff]   ;;  %v2100_v47 = vld [vmem:[#allocation10 + $0x120] ss:$12 sps:$4 sm:$0xff]  }
  0x77   :  { %1249 = vmatprep.subr.bf16.mxu1 %v2063_v48  ;;  %1208 = vmatprep.subr.bf16.mxu0 %v2060_v49  ;;  %v2103_v48 = vld [vmem:[#allocation10 + $0x2a0] ss:$12 sps:$4 sm:$0xff]   ;;  %v2105_v49 = vld [vmem:[#allocation10 + $0x2a4] ss:$12 sps:$4 sm:$0xff]  }
  0x7a   :  { %1250 = vmatpush1.bf16.msra.mxu1 %v2061_v50  ;;  %1209 = vmatpush1.bf16.msra.mxu0 %v2058_v51  ;;  %v2108_v50 = vld [vmem:[#allocation10 + $0x10c] ss:$12 sps:$4 sm:$0xff]  }
  0x7b   :  { %1251 = vmatprep.subr.bf16.mxu1 %v2069_v52  ;;  %1210 = vmatprep.subr.bf16.mxu0 %v2066_v53  ;;  %v2111_v51 = vld [vmem:[#allocation10 + $0x28c] ss:$12 sps:$4 sm:$0xff]   ;;  %v2106_v52 = vld [vmem:[#allocation10 + $0x108] ss:$12 sps:$4 sm:$0xff]  }
  0x7c   :  { %v2109_v53 = vld [vmem:[#allocation10 + $0x288] ss:$12 sps:$4 sm:$0xff]  }
  0x7e   :  { %1252 = vmatpush1.bf16.msra.mxu1 %v2067_v54  ;;  %1211 = vmatpush1.bf16.msra.mxu0 %v2064_v55  ;;  %v2114_v54 = vld [vmem:[#allocation10 + $0xf4] ss:$12 sps:$4 sm:$0xff]  }
  0x7f   :  { %1253 = vmatprep.subr.bf16.mxu1 %v2075_v56  ;;  %1212 = vmatprep.subr.bf16.mxu0 %v2072_v57  ;;  %v2117_v55 = vld [vmem:[#allocation10 + $0x274] ss:$12 sps:$4 sm:$0xff]   ;;  %v2112_v56 = vld [vmem:[#allocation10 + $0xf0] ss:$12 sps:$4 sm:$0xff]  }
  0x80   :  { %v2115_v57 = vld [vmem:[#allocation10 + $0x270] ss:$12 sps:$4 sm:$0xff]  }
  0x82   :  { %1254 = vmatpush1.bf16.msra.mxu1 %v2073_v58  ;;  %1213 = vmatpush1.bf16.msra.mxu0 %v2070_v59  ;;  %v2120_v58 = vld [vmem:[#allocation10 + $0xdc] ss:$12 sps:$4 sm:$0xff]  }
  0x83   :  { %1214 = vmatprep.subr.bf16.mxu0 %v2078_v30  ;;  %1255 = vmatprep.subr.bf16.mxu1 %v2081_v31  ;;  %v2123_v59 = vld [vmem:[#allocation10 + $0x25c] ss:$12 sps:$4 sm:$0xff]   ;;  %v454_v31 = vld [vmem:[%s2587_s3] sm:$0xf] }
  0x86   :  { %1215 = vmatpush1.bf16.msra.mxu0 %v2076_v32  ;;  %1256 = vmatpush1.bf16.msra.mxu1 %v2079_v33  ;;  %v455_v32 = vld [vmem:[#allocation8] sm:$0xf]  ;;  %v493_v33 = vrot.slane %v454_v31, %v2461_v1 }
  0x87   :  { %1216 = vmatprep.subr.bf16.mxu0 %v2084_v34  ;;  %1257 = vmatprep.subr.bf16.mxu1 %v2087_v35  ;;  %v501_v34 = vrot.slane %v454_v31, %v2470_v5  ;;  %v489_v35 = vrot.slane %v454_v31, %v2453_v62 }
  0x8a   :  { %1217 = vmatpush2.bf16.msra.mxu0 %v2082_v36  ;;  %1258 = vmatpush2.bf16.msra.mxu1 %v2085_v37  ;;  %v497_v36 = vrot.slane %v454_v31, %v2456_v63  ;;  %v2152_v31 = vld [vmem:[#allocation10 + $0x38] ss:$12 sps:$4 sm:$0xff]  }
  0x8b   :  { %1218 = vmatprep.subr.bf16.mxu0 %v2090_v38  ;;  %1259 = vmatprep.subr.bf16.mxu1 %v2093_v39 }
  0x8e   :  { %1219 = vmatpush2.bf16.msra.mxu0 %v2088_v40  ;;  %1260 = vmatpush2.bf16.msra.mxu1 %v2091_v41 }
  0x8f   :  { %1220 = vmatprep.subr.bf16.mxu0 %v2096_v42  ;;  %1261 = vmatprep.subr.bf16.mxu1 %v2099_v43  ;;  %v518_v42 = vrot.slane %v455_v32, %v2461_v1  ;;  %v526_v43 = vrot.slane %v455_v32, %v2470_v5 }
  0x92   :  { %1221 = vmatpush2.bf16.msra.mxu0 %v2094_v44  ;;  %1262 = vmatpush2.bf16.msra.mxu1 %v2097_v45  ;;  %v514_v44 = vrot.slane %v455_v32, %v2453_v62  ;;  %v522_v45 = vrot.slane %v455_v32, %v2456_v63  ;;  %v2153_v32 = vld [vmem:[#allocation10 + $0x1b8] ss:$12 sps:$4 sm:$0xff]  }
  0x93   :  { %1222 = vmatprep.subr.bf16.mxu0 %v2102_v46  ;;  %1263 = vmatprep.subr.bf16.mxu1 %v2105_v49 }
  0x96   :  { %1223 = vmatpush2.bf16.msra.mxu0 %v2100_v47  ;;  %1264 = vmatpush2.bf16.msra.mxu1 %v2103_v48 }
  0x97   :  { %1224 = vmatprep.subr.bf16.mxu0 %v2108_v50  ;;  %1265 = vmatprep.subr.bf16.mxu1 %v2111_v51 }
  0x9a   :  { %1225 = vmatpush2.bf16.msra.mxu0 %v2106_v52  ;;  %1266 = vmatpush2.bf16.msra.mxu1 %v2109_v53 }
  0x9b   :  { %1226 = vmatprep.subr.bf16.mxu0 %v2114_v54  ;;  %1267 = vmatprep.subr.bf16.mxu1 %v2117_v55 }
  0x9e   :  { %1227 = vmatpush2.bf16.msra.mxu0 %v2112_v56  ;;  %1268 = vmatpush2.bf16.msra.mxu1 %v2115_v57 }
  0x9f   :  { %1228 = vmatprep.subr.bf16.mxu0 %v2120_v58  ;;  %1269 = vmatprep.subr.bf16.mxu1 %v2123_v59 }
  0xa2   :  { %1229 = vmatpush2.bf16.msra.mxu0 %v2118_v60 }
 0x11c   :  { %v325_v6 = vpop.f32.mrf.mxu0 }
 0x11d   :  { %v366_v7 = vpop.f32.mrf.mxu1  ;;  %v2472_v8 = vadd.f32 %v325_v6, %v143_v2  ;;  %v2121_v2 = vld [vmem:[#allocation10 + $0x258] ss:$12 sps:$4 sm:$0xff]   ;;  %v2124_v6 = vld [vmem:[#allocation10 + $0xc0] ss:$12 sps:$4 sm:$0xff]  }
 0x11e   :  { %v2474_v9 = vadd.f32 %v366_v7, %v151_v3  ;;  %v327_v10 = vpop.f32.mrf.mxu0  ;;  %v2126_v3 = vld [vmem:[#allocation10 + $0xc4] ss:$12 sps:$4 sm:$0xff]   ;;  %1270 = vmatpush2.bf16.msra.mxu1 %v2121_v2  ;;  %v2127_v7 = vld [vmem:[#allocation10 + $0x240] ss:$12 sps:$4 sm:$0xff]  }
 0x11f   :  { %v368_v11 = vpop.f32.mrf.mxu1  ;;  %v2476_v12 = vadd.f32 %v327_v10, %v147_v4  ;;  %v461_v16 = vmul.f32 %v2472_v8, %v2472_v8  ;;  %v2129_v4 = vld [vmem:[#allocation10 + $0x244] ss:$12 sps:$4 sm:$0xff]   ;;  %1230 = vmatprep.subr.bf16.mxu0 %v2126_v3 }
 0x120   :  { %v329_v14 = vpop.f32.mrf.mxu0  ;;  %v463_v17 = vmul.f32 %v2474_v9, %v2474_v9  ;;  %v2488_v22 = vadd.f32 %v368_v11, %v155_v13  ;;  %1271 = vmatprep.subr.bf16.mxu1 %v2129_v4  ;;  %1231 = vmatpush2.bf16.msra.mxu0 %v2124_v6  ;;  %v2130_v10 = vld [vmem:[#allocation10 + $0x170] ss:$12 sps:$4 sm:$0xff]   ;;  %v2134_v4 = vld [vmem:[#allocation10 + $0x158] ss:$12 sps:$4 sm:$0xff]  }
 0x121   :  { %v370_v15 = vpop.f32.mrf.mxu1  ;;  %v462_v18 = vmul.f32 %v2476_v12, %v2476_v12  ;;  %v456_v19 = vadd.f32 %v2476_v12, %v2472_v8  ;;  %v2131_v11 = vld [vmem:[#allocation10 + $0x2f0] ss:$12 sps:$4 sm:$0xff]   ;;  %1886 = vmatprep.subr.bf16.mxu0 %v2130_v10  ;;  %v2135_v6 = vld [vmem:[#allocation10 + $0x2d8] ss:$12 sps:$4 sm:$0xff]  }
 0x122   :  { %v330_v20 = vpop.f32.mrf.mxu0  ;;  %v464_v28 = vmul.f32 %v2488_v22, %v2488_v22  ;;  %1272 = vmatpush2.bf16.msra.mxu1 %v2127_v7  ;;  %v2132_v2 = vld [vmem:[#allocation10 + $0xb0] ss:$12 sps:$4 sm:$0xff]   ;;  %v2136_v7 = vld [vmem:[#allocation10 + $0x98] ss:$12 sps:$4 sm:$0xff]  }
 0x123   :  { %v371_v21 = vpop.f32.mrf.mxu1  ;;  %v457_v24 = vadd.f32 %v456_v19, %v2474_v9  ;;  %v465_v25 = vadd.f32 %v462_v18, %v461_v16  ;;  %1908 = vmatprep.subr.bf16.mxu1 %v2131_v11  ;;  %v2133_v3 = vld [vmem:[#allocation10 + $0x230] ss:$12 sps:$4 sm:$0xff]   ;;  %v2137_v10 = vld [vmem:[#allocation10 + $0x218] ss:$12 sps:$4 sm:$0xff]   ;;  %v2138_v11 = vld [vmem:[#allocation10 + $0x140] ss:$12 sps:$4 sm:$0xff]  }
 0x125   :  { %v458_v26 = vadd.f32 %v457_v24, %v2488_v22  ;;  %v466_v27 = vadd.f32 %v465_v25, %v463_v17 }
 0x127   :  { %459 = vadd.xlane.f32.xlu0 %v458_v26  ;;  %v467_v29 = vadd.f32 %v466_v27, %v464_v28 }
 0x129   :  { %v2494_v13 = vpop.f32.mrf.mxu1  ;;  %v2496_v14 = vpop.f32.mrf.mxu0 }
 0x12b   :  { %468 = vadd.xlane.f32.xlu0 %v467_v29  ;;  %v1969_v15 = vpop.f32.mrf.mxu1  ;;  %v2498_v16 = vpop.f32.mrf.mxu0 }
 0x12c   :  { %v2139_v15 = vld [vmem:[#allocation10 + $0x2c0] ss:$12 sps:$4 sm:$0xff]  }
 0x12d   :  { %v451_v17 = vpop.f32.mrf.mxu1  ;;  %v411_v18 = vpop.f32.mrf.mxu0 }
 0x12e   :  { %v2140_v17 = vld [vmem:[#allocation10 + $0x80] ss:$12 sps:$4 sm:$0xff]  }
 0x12f   :  { %v1970_v19 = vpop.f32.mrf.mxu1  ;;  %v412_v20 = vpop.f32.mrf.mxu0  ;;  %v2141_v18 = vld [vmem:[#allocation10 + $0x200] ss:$12 sps:$4 sm:$0xff]  }
 0x130   :  { %v2142_v19 = vld [vmem:[#allocation10 + $0x128] ss:$12 sps:$4 sm:$0xff]  }
 0x131   :  { %v2143_v20 = vld [vmem:[#allocation10 + $0x2a8] ss:$12 sps:$4 sm:$0xff]  }
 0x1b0   :  { %v460_v21 = vpop.xlane.xlu0 %459 }
 0x1b1   :  { %v470_v24 = vmul.f32 0.0025, %v460_v21  ;;  %v2144_v21 = vld [vmem:[#allocation10 + $0x68] ss:$12 sps:$4 sm:$0xff]  }
 0x1b3   :  { %v472_v26 = vmul.f32 %v470_v24, %v470_v24  ;;  %v475_v37 = vsub.f32 %v2472_v8, %v470_v24  ;;  %v477_v38 = vsub.f32 %v2474_v9, %v470_v24  ;;  %v476_v39 = vsub.f32 %v2476_v12, %v470_v24 }
 0x1b4   :  { %v469_v25 = vpop.xlane.xlu0 %468  ;;  %v478_v40 = vsub.f32 %v2488_v22, %v470_v24  ;;  %v2145_v24 = vld [vmem:[#allocation10 + $0x1e8] ss:$12 sps:$4 sm:$0xff]  }
 0x1b5   :  { %v471_v27 = vmul.f32 0.0025, %v469_v25  ;;  %v2146_v25 = vld [vmem:[#allocation10 + $0x110] ss:$12 sps:$4 sm:$0xff]  }
 0x1b7   :  { %v473_v28 = vsub.f32 %v471_v27, %v472_v26  ;;  %v2147_v26 = vld [vmem:[#allocation10 + $0x290] ss:$12 sps:$4 sm:$0xff]  }
 0x1b8   :  { %v2148_v27 = vld [vmem:[#allocation10 + $0x50] ss:$12 sps:$4 sm:$0xff]  }
 0x1b9   :  { %v474_v29 = vmax.f32 %v473_v28, 0.0  ;;  %v2149_v28 = vld [vmem:[#allocation10 + $0x1d0] ss:$12 sps:$4 sm:$0xff]  }
 0x1bb   :  { %v479_v30 = vadd.f32 1e-05, %v474_v29  ;;  %v2150_v29 = vld [vmem:[#allocation10 + $0xf8] ss:$12 sps:$4 sm:$0xff]  }
 0x1bd   :  { %2186 = vrsqrt.f32 %v479_v30  ;;  %v2151_v30 = vld [vmem:[#allocation10 + $0x278] ss:$12 sps:$4 sm:$0xff]  }
 0x1ca   :  { %v2187_v41 = vpop.eup %2186 }
 0x1cb   :  { %v482_v46 = vmul.f32 %v2187_v41, %v476_v39  ;;  %v484_v47 = vmul.f32 %v2187_v41, %v478_v40  ;;  %v481_v48 = vmul.f32 %v2187_v41, %v475_v37  ;;  %v483_v49 = vmul.f32 %v2187_v41, %v477_v38  ;;  %v2158_v37 = vld [vmem:[#allocation10 + $0xc8] ss:$12 sps:$4 sm:$0xff]  }
 0x1cc   :  { %v2159_v38 = vld [vmem:[#allocation10 + $0x248] ss:$12 sps:$4 sm:$0xff]  }
 0x1cd   :  { %v507_v8 = vmul.f32 %v493_v33, %v482_v46  ;;  %v509_v50 = vmul.f32 %v501_v34, %v484_v47  ;;  %v506_v9 = vmul.f32 %v489_v35, %v481_v48  ;;  %v508_v51 = vmul.f32 %v497_v36, %v483_v49  ;;  %v2154_v33 = vld [vmem:[#allocation10 + $0xe0] ss:$12 sps:$4 sm:$0xff]   ;;  %v2160_v39 = vld [vmem:[#allocation10 + $0x8] ss:$12 sps:$4 sm:$0xff]  }
 0x1ce   :  { %v2155_v34 = vld [vmem:[#allocation10 + $0x260] ss:$12 sps:$4 sm:$0xff]   ;;  %v2161_v40 = vld [vmem:[#allocation10 + $0x188] ss:$12 sps:$4 sm:$0xff]  }
 0x1cf   :  { %v532_v12 = vadd.f32 %v518_v42, %v507_v8  ;;  %v534_v52 = vadd.f32 %v526_v43, %v509_v50  ;;  %v531_v22 = vadd.f32 %v514_v44, %v506_v9  ;;  %v533_v53 = vadd.f32 %v522_v45, %v508_v51  ;;  %v2156_v35 = vld [vmem:[#allocation10 + $0x20] ss:$12 sps:$4 sm:$0xff]  }
 0x1d0   :  { %v2157_v36 = vld [vmem:[#allocation10 + $0x1a0] ss:$12 sps:$4 sm:$0xff]  }
 0x1d1   :  { %v536_v54 = vmax.f32 %v532_v12, 0.0  ;;  %v538_v55 = vmax.f32 %v534_v52, 0.0  ;;  %v535_v56 = vmax.f32 %v531_v22, 0.0  ;;  %v537_v5 = vmax.f32 %v533_v53, 0.0  ;;  %v671_v49 = vld [vmem:[%s2590_s6] sm:$0x7] }
 0x1d2   :  { %v680_v8 = vrot.slane %v671_v49, %v2461_v1  ;;  %v676_v50 = vrot.slane %v671_v49, %v2453_v62  ;;  %v684_v22 = vrot.slane %v671_v49, %v2456_v63 }
 0x1d3   :  { %v540_v57 = vpack.c.bf16 %v536_v54, %v536_v54  ;;  %v542_v58 = vpack.c.bf16 %v538_v55, %v538_v55  ;;  %v2515_v59 = vpack.c.bf16 %v535_v56, %v535_v56  ;;  %v2517_v60 = vpack.c.bf16 %v537_v5, %v537_v5 }
 0x1d5   :  { %1232 = vmatprep.mubr.bf16.mxu0 %v540_v57  ;;  %1273 = vmatprep.mubr.bf16.mxu1 %v542_v58 }
 0x1d6   :  { %1233 = vmatmul.mubr.bf16.vlgmr.msra.gmra.mxu0 %v2515_v59  ;;  %1274 = vmatmul.mubr.bf16.vlgmr.msra.gmra.mxu1 %v2517_v60 }
 0x1d7   :  { %1887 = vmatpush3.bf16.msra.mxu0 %v2132_v2  ;;  %1909 = vmatpush3.bf16.msra.mxu1 %v2133_v3 }
 0x1d8   :  { %1314 = vmatprep.mubr.bf16.mxu0 %v540_v57  ;;  %1354 = vmatprep.mubr.bf16.mxu1 %v542_v58 }
 0x1d9   :  { %1888 = vmatprep.subr.bf16.mxu0 %v2134_v4  ;;  %1910 = vmatprep.subr.bf16.mxu1 %v2135_v6 }
 0x1db   :  { %1889 = vmatpush3.bf16.msra.mxu0 %v2136_v7  ;;  %1911 = vmatpush3.bf16.msra.mxu1 %v2137_v10 }
 0x1dc   :  { %1890 = vmatprep.subr.bf16.mxu0 %v2138_v11  ;;  %1912 = vmatprep.subr.bf16.mxu1 %v2139_v15 }
 0x1df   :  { %1891 = vmatpush3.bf16.msra.mxu0 %v2140_v17  ;;  %1913 = vmatpush3.bf16.msra.mxu1 %v2141_v18 }
 0x1e0   :  { %1892 = vmatprep.subr.bf16.mxu0 %v2142_v19  ;;  %1914 = vmatprep.subr.bf16.mxu1 %v2143_v20  ;;  %v2162_v19 = vld [vmem:[#allocation11 + $0x78] sm:$0xff]  }
 0x1e1   :  { %v2163_v20 = vld [vmem:[#allocation11 + $0xb8] sm:$0xff]  }
 0x1e3   :  { %1893 = vmatpush3.bf16.msra.mxu0 %v2144_v21  ;;  %1915 = vmatpush3.bf16.msra.mxu1 %v2145_v24  ;;  %v2164_v21 = vld [vmem:[#allocation11 + $0x38] sm:$0xff]   ;;  %v2165_v24 = vld [vmem:[#allocation11 + $0x70] sm:$0xff]  }
 0x1e4   :  { %1894 = vmatprep.subr.bf16.mxu0 %v2146_v25  ;;  %1916 = vmatprep.subr.bf16.mxu1 %v2147_v26  ;;  %v2166_v25 = vld [vmem:[#allocation11 + $0xb0] sm:$0xff]  }
 0x1e5   :  { %v2167_v26 = vld [vmem:[#allocation11 + $0x30] sm:$0xff]  }
 0x1e7   :  { %1895 = vmatpush3.bf16.msra.mxu0 %v2148_v27  ;;  %1917 = vmatpush3.bf16.msra.mxu1 %v2149_v28  ;;  %v2168_v27 = vld [vmem:[#allocation11 + $0x68] sm:$0xff]  }
 0x1e8   :  { %1896 = vmatprep.subr.bf16.mxu0 %v2150_v29  ;;  %1918 = vmatprep.subr.bf16.mxu1 %v2151_v30  ;;  %v2169_v28 = vld [vmem:[#allocation11 + $0xa8] sm:$0xff]   ;;  %v2171_v30 = vld [vmem:[#allocation11 + $0x60] sm:$0xff]  }
 0x1e9   :  { %v2170_v29 = vld [vmem:[#allocation11 + $0x28] sm:$0xff]  }
 0x1eb   :  { %1897 = vmatpush3.bf16.msra.mxu0 %v2152_v31  ;;  %1919 = vmatpush3.bf16.msra.mxu1 %v2153_v32  ;;  %v2172_v31 = vld [vmem:[#allocation11 + $0xa0] sm:$0xff]  }
 0x1ec   :  { %1898 = vmatprep.subr.bf16.mxu0 %v2154_v33  ;;  %1920 = vmatprep.subr.bf16.mxu1 %v2155_v34  ;;  %v2173_v32 = vld [vmem:[#allocation11 + $0x20] sm:$0xff]   ;;  %v2174_v33 = vld [vmem:[#allocation11 + $0x58] sm:$0xff]  }
 0x1ed   :  { %v2175_v34 = vld [vmem:[#allocation11 + $0x98] sm:$0xff]  }
 0x1ef   :  { %1899 = vmatpush3.bf16.msra.mxu0 %v2156_v35  ;;  %1921 = vmatpush3.bf16.msra.mxu1 %v2157_v36  ;;  %v2176_v35 = vld [vmem:[#allocation11 + $0x18] sm:$0xff]   ;;  %v2177_v36 = vld [vmem:[#allocation11 + $0x50] sm:$0xff]  }
 0x1f0   :  { %1900 = vmatprep.subr.bf16.mxu0 %v2158_v37  ;;  %1922 = vmatprep.subr.bf16.mxu1 %v2159_v38  ;;  %v2178_v37 = vld [vmem:[#allocation11 + $0x90] sm:$0xff]  }
 0x1f1   :  { %v2179_v38 = vld [vmem:[#allocation11 + $0x10] sm:$0xff]  }
 0x1f3   :  { %1901 = vmatpush3.bf16.msra.mxu0 %v2160_v39  ;;  %1923 = vmatpush3.bf16.msra.mxu1 %v2161_v40  ;;  %v2180_v39 = vld [vmem:[#allocation11 + $0x48] sm:$0xff]  }
 0x1f4   :  { %1971 = vmatprep.subr.bf16.mxu1 %v2353_v23  ;;  %1930 = vmatprep.subr.bf16.mxu0 %v2162_v19  ;;  %v2181_v40 = vld [vmem:[#allocation11 + $0x88] sm:$0xff]  }
 0x1f6   :  { %1315 = vmatmul.mubr.bf16.vlgmr.msra.gmra.mxu0 %v2515_v59  ;;  %1355 = vmatmul.mubr.bf16.vlgmr.msra.gmra.mxu1 %v2517_v60 }
 0x1f7   :  { %1987 = vmatprep.mubr.msk.bf16.mxu1 %vm2354_vm2, %v2353_v23  ;;  %1972 = vmatpush3.bf16.msra.mxu1 %v2163_v20 }
 0x1f8   :  { %1931 = vmatpush3.bf16.msra.mxu0 %v2164_v21  ;;  %1973 = vmatprep.subr.bf16.mxu1 %v2353_v23 }
 0x1f9   :  { %1932 = vmatprep.subr.bf16.mxu0 %v2165_v24 }
 0x1fb   :  { %1974 = vmatpush3.bf16.msra.mxu1 %v2166_v25 }
 0x1fc   :  { %1933 = vmatpush3.bf16.msra.mxu0 %v2167_v26  ;;  %1975 = vmatprep.subr.bf16.mxu1 %v2353_v23 }
 0x1fd   :  { %1934 = vmatprep.subr.bf16.mxu0 %v2168_v27 }
 0x1ff   :  { %1976 = vmatpush3.bf16.msra.mxu1 %v2169_v28 }
 0x200   :  { %1935 = vmatpush3.bf16.msra.mxu0 %v2170_v29  ;;  %1977 = vmatprep.subr.bf16.mxu1 %v2353_v23 }
 0x201   :  { %1936 = vmatprep.subr.bf16.mxu0 %v2171_v30 }
 0x203   :  { %1978 = vmatpush3.bf16.msra.mxu1 %v2172_v31 }
 0x204   :  { %1937 = vmatpush3.bf16.msra.mxu0 %v2173_v32  ;;  %1979 = vmatprep.subr.bf16.mxu1 %v2353_v23 }
 0x205   :  { %1938 = vmatprep.subr.bf16.mxu0 %v2174_v33 }
 0x207   :  { %1980 = vmatpush3.bf16.msra.mxu1 %v2175_v34 }
 0x208   :  { %1939 = vmatpush3.bf16.msra.mxu0 %v2176_v35  ;;  %1981 = vmatprep.subr.bf16.mxu1 %v2353_v23 }
 0x209   :  { %1940 = vmatprep.subr.bf16.mxu0 %v2177_v36 }
 0x20b   :  { %1982 = vmatpush3.bf16.msra.mxu1 %v2178_v37 }
 0x20c   :  { %1941 = vmatpush3.bf16.msra.mxu0 %v2179_v38  ;;  %1983 = vmatprep.subr.bf16.mxu1 %v2353_v23 }
 0x20d   :  { %1942 = vmatprep.subr.bf16.mxu0 %v2180_v39 }
 0x20f   :  { %1984 = vmatpush3.bf16.msra.mxu1 %v2181_v40 }
 0x210   :  { %1985 = vmatprep.subr.bf16.mxu1 %v2353_v23  ;;  %v162_v23 = vsub.s32 5, %v2450_v61 }
 0x296   :  { %v1234_v41 = vpop.f32.mrf.mxu0  ;;  %v1275_v42 = vpop.f32.mrf.mxu1 }
 0x297   :  { %v1235_v52 = vadd.f32 %v1234_v41, %v676_v50  ;;  %v2182_v41 = vld [vmem:[#allocation11 + $0x8] sm:$0xff]  }
 0x298   :  { %v1236_v43 = vpop.f32.mrf.mxu0  ;;  %v1277_v44 = vpop.f32.mrf.mxu1  ;;  %1943 = vmatpush3.bf16.msra.mxu0 %v2182_v41 }
 0x299   :  { %v1237_v9 = vadd.f32 %v1236_v43, %v680_v8  ;;  %v2534_v58 = vadd.f32 %v1275_v42, %v1235_v52  ;;  %v2183_v42 = vld [vmem:[#allocation11 + $0x40] sm:$0xff]   ;;  %v166_v52 = vsub.s32 6, %v2450_v61 }
 0x29a   :  { %v1238_v45 = vpop.f32.mrf.mxu0  ;;  %v1279_v46 = vpop.f32.mrf.mxu1  ;;  %v2184_v43 = vld [vmem:[#allocation11 + $0x80] sm:$0xff]   ;;  %1944 = vmatprep.subr.bf16.mxu0 %v2183_v42 }
 0x29b   :  { %v2532_v55 = vadd.f32 %v1277_v44, %v1237_v9  ;;  %v1368_v10 = vmul.f32 %v2534_v58, %v2534_v58  ;;  %v2185_v44 = vld [vmem:[#allocation11] sm:$0xff]   ;;  %1986 = vmatpush3.bf16.msra.mxu1 %v2184_v43 }
 0x29c   :  { %v1239_v47 = vpop.f32.mrf.mxu0  ;;  %v1280_v48 = vpop.f32.mrf.mxu1  ;;  %1945 = vmatpush3.bf16.msra.mxu0 %v2185_v44 }
 0x29d   :  { %v1369_v4 = vmul.f32 %v2532_v55, %v2532_v55  ;;  %v1364_v7 = vadd.f32 %v2532_v55, %v2534_v58 }
 0x29f   :  { %v1371_v17 = vadd.f32 %v1369_v4, %v1368_v10 }
 0x2b6   :  { %v1902_v51 = vpop.f32.mrf.mxu0  ;;  %v1924_v12 = vpop.f32.mrf.mxu1 }
 0x2b8   :  { %v1903_v53 = vpop.f32.mrf.mxu0  ;;  %v1925_v54 = vpop.f32.mrf.mxu1 }
 0x2b9   :  { %v1904_v56 = vadd.f32 %v1903_v53, %v1902_v51  ;;  %v1926_v60 = vadd.f32 %v1925_v54, %v1924_v12  ;;  %v158_v51 = vsub.s32 4, %v2450_v61  ;;  %v1362_v12 = vld [vmem:[%s2591_s7] sm:$0x7]  ;;  %v163_v61 = vrot.slane %v2458_v0, %v162_v23 }
 0x2ba   :  { %v1905_v5 = vpop.f32.mrf.mxu0  ;;  %v1927_v57 = vpop.f32.mrf.mxu1  ;;  %v1396_v54 = vrot.slane %v1362_v12, %v2461_v1 }
 0x2bb   :  { %v1317_v59 = vadd.f32 %v1904_v56, %v684_v22  ;;  %v1363_v22 = vld [vmem:[%s2592_s8] sm:$0x7]  ;;  %v159_v53 = vrot.slane %v2458_v0, %v158_v51  ;;  %v1400_v56 = vrot.slane %v1362_v12, %v2456_v63  ;;  %v410_v20 = vadd.f32 %v2498_v16, %v163_v61 }
 0x2bc   :  { %v1906_v2 = vpop.f32.mrf.mxu0  ;;  %v1928_v3 = vpop.f32.mrf.mxu1  ;;  %v1415_v4 = vrot.slane %v1363_v22, %v2461_v1  ;;  %v1857_v16 = vld [vmem:[%s2594_s10] ss:$0 sm:$0xff] }
 0x2bd   :  { %v2538_v6 = vadd.f32 %v1926_v60, %v1317_v59  ;;  %v1392_v60 = vrot.slane %v1362_v12, %v2453_v62  ;;  %v167_v3 = vrot.slane %v2458_v0, %v166_v52 }
 0x2bf   :  { %v1365_v11 = vadd.f32 %v1364_v7, %v2538_v6  ;;  %v1370_v15 = vmul.f32 %v2538_v6, %v2538_v6  ;;  %v1419_v7 = vrot.slane %v1363_v22, %v2456_v63  ;;  %v449_v19 = vadd.f32 %v2494_v13, %v167_v3 }
 0x2c1   :  { %1366 = vadd.xlane.f32.xlu1 %v1365_v11  ;;  %v1372_v18 = vadd.f32 %v1371_v17, %v1370_v15 }
 0x2c5   :  { %1373 = vadd.xlane.f32.xlu1 %v1372_v18 }
 0x34a   :  { %v1367_v45 = vpop.xlane.xlu1 %1366 }
 0x34b   :  { %v1375_v46 = vmul.f32 0.0033333334, %v1367_v45 }
 0x34d   :  { %v1377_v48 = vmul.f32 %v1375_v46, %v1375_v46  ;;  %v1380_v5 = vsub.f32 %v2534_v58, %v1375_v46  ;;  %v1381_v57 = vsub.f32 %v2532_v55, %v1375_v46  ;;  %v1382_v59 = vsub.f32 %v2538_v6, %v1375_v46 }
 0x34e   :  { %v1374_v47 = vpop.xlane.xlu1 %1373  ;;  %v1411_v58 = vrot.slane %v1363_v22, %v2453_v62  ;;  %v408_v6 = vadd.f32 %v2496_v14, %v159_v53 }
 0x34f   :  { %v1376_v49 = vmul.f32 0.0033333334, %v1374_v47 }
 0x351   :  { %v1378_v8 = vsub.f32 %v1376_v49, %v1377_v48 }
 0x353   :  { %v1379_v50 = vmax.f32 %v1378_v8, 0.0 }
 0x355   :  { %v1383_v9 = vadd.f32 1e-05, %v1379_v50 }
 0x357   :  { %2188 = vrsqrt.f32 %v1383_v9 }
 0x364   :  { %v2189_v2 = vpop.eup %2188 }
 0x365   :  { %v1386_v10 = vmul.f32 %v2189_v2, %v1381_v57  ;;  %v1387_v11 = vmul.f32 %v2189_v2, %v1382_v59  ;;  %v1385_v15 = vmul.f32 %v2189_v2, %v1380_v5 }
 0x367   :  { %v1405_v17 = vmul.f32 %v1396_v54, %v1386_v10  ;;  %v1406_v55 = vmul.f32 %v1400_v56, %v1387_v11  ;;  %v1404_v18 = vmul.f32 %v1392_v60, %v1385_v15 }
 0x369   :  { %v1424_v21 = vadd.f32 %v1415_v4, %v1405_v17  ;;  %v1425_v0 = vadd.f32 %v1419_v7, %v1406_v55  ;;  %v1423_v24 = vadd.f32 %v1411_v58, %v1404_v18 }
 0x36b   :  { %v1427_v1 = vadd.f32 %v1424_v21, %v410_v20  ;;  %v1428_v25 = vadd.f32 %v1425_v0, %v449_v19  ;;  %v1426_v63 = vadd.f32 %v1423_v24, %v408_v6 }
 0x36d   :  { %v1430_v26 = vmax.f32 %v1427_v1, 0.0  ;;  %v1431_v27 = vmax.f32 %v1428_v25, 0.0  ;;  %v1429_v28 = vmax.f32 %v1426_v63, 0.0 }
 0x36f   :  { %v1433_v29 = vpack.c.bf16 %v1430_v26, %v1430_v26  ;;  %v1434_v62 = vpack.c.bf16 %v1431_v27, %v1431_v27  ;;  %v1432_v30 = vpack.c.bf16 %v1429_v28, %v1429_v28 }
 0x371   :  { %1666 = vmatprep.mubr.bf16.mxu0 %v1433_v29  ;;  %1988 = vmatmul.mubr.bf16.vlgmr.msra.gmra.mxu1 %v1434_v62 }
 0x372   :  { %1667 = vmatmul.mubr.bf16.vlgmr.msra.gmra.mxu0 %v1432_v30 }
 0x431   :  { %v1708_v14 = vpop.f32.mrf.mxu1 }
 0x432   :  { %v1946_v31 = vpop.f32.mrf.mxu0 }
 0x433   :  { %v1989_v13 = vpop.f32.mrf.mxu1 }
 0x434   :  { %v1947_v32 = vpop.f32.mrf.mxu0 }
 0x435   :  { %v1948_v33 = vadd.f32 %v1947_v32, %v1946_v31  ;;  %v1711_v34 = vpop.f32.mrf.mxu1 }
 0x436   :  { %v1949_v35 = vpop.f32.mrf.mxu0 }
 0x437   :  { %v1669_v36 = vadd.f32 %v1948_v33, %v1857_v16  ;;  %v1990_v37 = vpop.f32.mrf.mxu1 }
 0x438   :  { %v1950_v38 = vpop.f32.mrf.mxu0 }
 0x439   :  { %v1709_v39 = vadd.f32 %v1708_v14, %v1669_v36 }
 0x43b   :  { %1714 = vst [vmem:[#allocation13] sm:$0xff] %v1709_v39 }
 0x43c   :  { %2321 = shalt.err (!%p2318_p6)
}
 0x43d   :  { %1724 = dma.vmem_to_hbm [thread:$0]  %s1722_s16, 128, %s2595_s11, [#allocation4]  }
 0x43e   :  { %2338 = dma.done.wait [#allocation4], 128  }
 0x43f   :  { %2339 = vsyncadd [#allocation4], 4294967168 }
 0x440   :  { %1728 = vsyncpa [#allocation3], 1 }
 0x441   :  { %1729 = vsyncpa [#allocation6], 1 }
 0x442   :  { %1730 = vsyncpa [#allocation9], 1 }
 0x443   :  { %1731 = vsyncpa [#allocation12], 1 }
 0x444   :  { %1732 = vsyncpa [#allocation4], 1 }

</bundles_post_ra>
